<compile_context>
chip_gen: v7x
topology: tpu7x:2x2x1
jax: 0.10.0
libtpu: 0.0.40
codegen_flags: <defaults>
</compile_context>

<pallas_src>
import jax
import jax.numpy as jnp
from jax.experimental import pallas as pl
from jax.experimental.pallas import tpu as pltpu


# ----------------------------------------------------------------------------
# Fused encoder-layer kernel (whole layer == one grid step)
# ----------------------------------------------------------------------------
def _make_encoder_layer_kernel(num_heads, eps, has_attn_mask, compute_dtype):
    def kernel(*refs):
        if has_attn_mask:
            (x_ref, kp_ref, am_ref,
             wqkv_ref, bqkv_ref, wo_ref, bo_ref, ln1_g_ref, ln1_b_ref,
             w1_ref, b1_ref, w2_ref, b2_ref, ln2_g_ref, ln2_b_ref,
             o_ref) = refs
        else:
            (x_ref, kp_ref,
             wqkv_ref, bqkv_ref, wo_ref, bo_ref, ln1_g_ref, ln1_b_ref,
             w1_ref, b1_ref, w2_ref, b2_ref, ln2_g_ref, ln2_b_ref,
             o_ref) = refs
            am_ref = None

        bt, e = x_ref.shape                     # (B*T, E)
        batch, _, t = kp_ref.shape              # (B, 1, T)
        dh = e // num_heads

        def mm(a, w_ref):
            # matmul operands optionally bf16 (v5e/v6e); accumulation stays f32.
            return jnp.dot(a.astype(compute_dtype), w_ref[...],
                           preferred_element_type=jnp.float32)

        x2d = x_ref[...].astype(jnp.float32)    # (B*T, E)  residual #1

        # ---- fused QKV projection (softmax scale pre-folded into Q cols/bias) ----
        qkv = mm(x2d, wqkv_ref) + bqkv_ref[...]               # (B*T, 3E) f32

        am = am_ref[...] if has_attn_mask else None           # (T, T) or None

        # ---- multi-head attention; head outputs gathered in registers, no scratch ----
        # TODO(synk): at real T replace the static unroll with lax.fori_loop over
        #             heads + a flash-style KV-block loop.
        attn_rows = []
        for bb in range(batch):                                # static, B small
            bias = kp_ref[bb]                                  # (1, T) additive, f32
            if am is not None:
                bias = am + bias                               # (T, T)
            qkv_b = qkv[bb * t:(bb + 1) * t, :]                # (T, 3E) sublane slice
            head_outs = []
            for h in range(num_heads):                         # static unroll
                q = qkv_b[:, h * dh:(h + 1) * dh]
                k = qkv_b[:, e + h * dh:e + (h + 1) * dh]
                v = qkv_b[:, 2 * e + h * dh:2 * e + (h + 1) * dh]
                s = jnp.dot(q.astype(compute_dtype),
                            k.astype(compute_dtype).T,
                            preferred_element_type=jnp.float32) + bias
                m = jnp.max(s, axis=-1, keepdims=True)
                p = jnp.exp(s - m)
                denom = jnp.sum(p, axis=-1, keepdims=True)
                o_h = jnp.dot(p.astype(compute_dtype),
                              v.astype(compute_dtype),
                              preferred_element_type=jnp.float32)
                # normalize AFTER the P.V matmul: T*Dh muls instead of T*T
                head_outs.append(o_h * pl.reciprocal(denom))   # exact reciprocal
            attn_rows.append(jnp.concatenate(head_outs, axis=-1))  # (T, E)
        attn = jnp.concatenate(attn_rows, axis=0)              # (B*T, E)

        # ---- output projection with fused (residual add + LayerNorm1) epilogue ----
        y = mm(attn, wo_ref) + bo_ref[...]
        x1 = y + x2d                                           # dropout == identity
        mu = jnp.mean(x1, axis=-1, keepdims=True)
        xc = x1 - mu
        var = jnp.mean(xc * xc, axis=-1, keepdims=True)
        x1 = xc * jax.lax.rsqrt(var + eps) * ln1_g_ref[...] + ln1_b_ref[...]

        # ---- fc1 + ReLU + fc2 fused (hidden never leaves vregs/VMEM),
        #      with fused (residual add + LayerNorm2) epilogue ----
        hdn = jnp.maximum(mm(x1, w1_ref) + b1_ref[...], 0.0)
        y2 = mm(hdn, w2_ref) + b2_ref[...]
        x2 = y2 + x1
        mu2 = jnp.mean(x2, axis=-1, keepdims=True)
        xc2 = x2 - mu2
        var2 = jnp.mean(xc2 * xc2, axis=-1, keepdims=True)
        out = xc2 * jax.lax.rsqrt(var2 + eps) * ln2_g_ref[...] + ln2_b_ref[...]

        o_ref[...] = out.astype(o_ref.dtype)

    return kernel


# ----------------------------------------------------------------------------
# Wrapper: one fused pallas_call for the whole sub-layer
# ----------------------------------------------------------------------------
def encoder_layer_forward(x, encoder_padding_mask, params, attn_mask=None,
                          compute_dtype=jnp.float32):
    """
    x: (T, B, E) float32
    encoder_padding_mask: (B, T) {0,1}, 1 = padding
    attn_mask: optional (T, T) {0,1}, 1 = masked out
    returns (T, B, E)
    """
    t, b, e = x.shape
    h = int(params["num_heads"])
    dh = e // h
    f = params["w1"].shape[1]
    dtype = x.dtype
    eps = float(params.get("eps", 1e-5))
    scale = float(dh) ** -0.5

    # (T,B,E) -> (B*T,E): one small transpose + free reshape so the whole layer is a
    # single lane/sublane-dense 2-D slab processed in ONE grid step.
    x_flat = jnp.transpose(x, (1, 0, 2)).reshape(b * t, e)

    # fused QKV weight / bias with the softmax scale folded into the Q part
    # (trace-time constants under jit -> zero runtime cost).
    wqkv = jnp.concatenate([params["wq"] * scale, params["wk"], params["wv"]], axis=1)
    bqkv = jnp.concatenate([params["bq"] * scale, params["bk"],
                            params["bv"]]).reshape(1, 3 * e)

    # additive key-padding bias (B,1,T). Finite large-negative: a fully padded key
    # row yields a finite uniform softmax instead of fairseq's -inf -> NaN.
    kp_bias = jnp.where(encoder_padding_mask.astype(jnp.bool_)[:, None, :],
                        jnp.float32(-1e30), jnp.float32(0.0))

    # cast only the matmul-weight operands (biases / LN params / masks stay f32)
    cd = compute_dtype
    wqkv_c = wqkv.astype(cd)
    wo_c = params["wo"].astype(cd)
    w1_c = params["w1"].astype(cd)
    w2_c = params["w2"].astype(cd)

    def full(shape):
        return pl.BlockSpec(shape, lambda i, _s=shape: (0,) * len(_s))

    inputs = [x_flat, kp_bias]
    in_specs = [full((b * t, e)), full((b, 1, t))]

    has_attn_mask = attn_mask is not None
    if has_attn_mask:
        # fairseq: attn_mask.masked_fill(attn_mask.bool(), -1e8)
        am_bias = jnp.where(attn_mask.astype(jnp.bool_),
                            jnp.float32(-1e8), jnp.float32(0.0))
        inputs.append(am_bias)
        in_specs.append(full((t, t)))

    inputs += [wqkv_c, bqkv,
               wo_c, params["bo"].reshape(1, e),
               params["ln1_g"].reshape(1, e), params["ln1_b"].reshape(1, e),
               w1_c, params["b1"].reshape(1, f),
               w2_c, params["b2"].reshape(1, e),
               params["ln2_g"].reshape(1, e), params["ln2_b"].reshape(1, e)]
    in_specs += [full((e, 3 * e)), full((1, 3 * e)),
                 full((e, e)), full((1, e)),
                 full((1, e)), full((1, e)),
                 full((e, f)), full((1, f)),
                 full((f, e)), full((1, e)),
                 full((1, e)), full((1, e))]

    # advisory cost estimate for the XLA scheduler
    flops = (2 * b * t * e * 3 * e          # qkv
             + 4 * b * h * t * t * dh       # qk^T + pv
             + 2 * b * t * e * e            # wo
             + 2 * b * t * e * f            # fc1
             + 2 * b * t * f * e)           # fc2
    transcendentals = b * h * t * (t + 1)
    wbytes = jnp.dtype(cd).itemsize
    bytes_accessed = (4 * (2 * b * t * e + b * t + (t * t if has_attn_mask else 0)
                           + 3 * e + e + f + e + 4 * e)
                      + wbytes * (3 * e * e + e * e + e * f + f * e))

    kernel = _make_encoder_layer_kernel(h, eps, has_attn_mask, cd)

    out_flat = pl.pallas_call(
        kernel,
        out_shape=jax.ShapeDtypeStruct((b * t, e), dtype),
        grid=(1,),                          # whole layer in ONE step: no per-step overhead
        in_specs=in_specs,
        out_specs=full((b * t, e)),
        compiler_params=pltpu.CompilerParams(dimension_semantics=("arbitrary",)),
        cost_estimate=pl.CostEstimate(flops=flops,
                                      transcendentals=transcendentals,
                                      bytes_accessed=bytes_accessed),
    )(*inputs)

    return out_flat.reshape(b, t, e).transpose(1, 0, 2)


# ----------------------------------------------------------------------------
# Pure-JAX reference (HIGHEST matmul precision -> tight comparison tolerance)
# ----------------------------------------------------------------------------
_PREC = jax.lax.Precision.HIGHEST


def _layer_norm_ref(x, g, b, eps=1e-5):
    mu = jnp.mean(x, axis=-1, keepdims=True)
    xc = x - mu
    var = jnp.mean(xc * xc, axis=-1, keepdims=True)
    return xc * jax.lax.rsqrt(var + eps) * g + b


def _reference_forward(x, encoder_padding_mask, params, attn_mask=None):
    t, b, e = x.shape
    h = params["num_heads"]
    dh = e // h
    eps = float(params.get("eps", 1e-5))
    x2 = x.reshape(t * b, e)
    residual = x2
    q = jnp.dot(x2, params["wq"], precision=_PREC) + params["bq"]
    k = jnp.dot(x2, params["wk"], precision=_PREC) + params["bk"]
    v = jnp.dot(x2, params["wv"], precision=_PREC) + params["bv"]

    def to_heads(z):
        return z.reshape(t, b, h, dh).transpose(1, 2, 0, 3)   # (B,H,T,Dh)

    qh = to_heads(q) * (float(dh) ** -0.5)
    kh, vh = to_heads(k), to_heads(v)
    s = jnp.einsum("bhtd,bhsd->bhts", qh, kh, precision=_PREC)
    if attn_mask is not None:
        s = s + jnp.where(attn_mask.astype(bool), -1e8, 0.0)[None, None]
    s = s + jnp.where(encoder_padding_mask.astype(bool), -1e30, 0.0)[:, None, None, :]
    p = jax.nn.softmax(s, axis=-1)
    o = jnp.einsum("bhts,bhsd->bhtd", p, vh, precision=_PREC)
    o = o.transpose(2, 0, 1, 3).reshape(t * b, e)
    o = jnp.dot(o, params["wo"], precision=_PREC) + params["bo"]
    x2 = _layer_norm_ref(residual + o, params["ln1_g"], params["ln1_b"], eps)
    r2 = x2
    hid = jnp.maximum(jnp.dot(x2, params["w1"], precision=_PREC) + params["b1"], 0.0)
    y = jnp.dot(hid, params["w2"], precision=_PREC) + params["b2"]
    x2 = _layer_norm_ref(r2 + y, params["ln2_g"], params["ln2_b"], eps)
    return x2.reshape(t, b, e)


# ----------------------------------------------------------------------------
# Deterministic parameter construction (4 independent encoders, like the module)
# ----------------------------------------------------------------------------
def make_params(key, embed_dim, ffn_dim, num_heads, num_encoders=4):
    encoders = []
    for i in range(num_encoders):
        ks = jax.random.split(jax.random.fold_in(key, i), 12)
        s_e = 1.0 / jnp.sqrt(jnp.float32(embed_dim))
        s_f = 1.0 / jnp.sqrt(jnp.float32(ffn_dim))
        p = {
            "num_heads": num_heads,
            "eps": 1e-5,
            "wq": jax.random.normal(ks[0], (embed_dim, embed_dim), jnp.float32) * s_e,
            "bq": jax.random.normal(ks[1], (embed_dim,), jnp.float32) * 0.02,
            "wk": jax.random.normal(ks[2], (embed_dim, embed_dim), jnp.float32) * s_e,
            "bk": jax.random.normal(ks[3], (embed_dim,), jnp.float32) * 0.02,
            "wv": jax.random.normal(ks[4], (embed_dim, embed_dim), jnp.float32) * s_e,
            "bv": jax.random.normal(ks[5], (embed_dim,), jnp.float32) * 0.02,
            "wo": jax.random.normal(ks[6], (embed_dim, embed_dim), jnp.float32) * s_e,
            "bo": jax.random.normal(ks[7], (embed_dim,), jnp.float32) * 0.02,
            "w1": jax.random.normal(ks[8], (embed_dim, ffn_dim), jnp.float32) * s_e,
            "b1": jax.random.normal(ks[9], (ffn_dim,), jnp.float32) * 0.02,
            "w2": jax.random.normal(ks[10], (ffn_dim, embed_dim), jnp.float32) * s_f,
            "b2": jax.random.normal(ks[11], (embed_dim,), jnp.float32) * 0.02,
            "ln1_g": jnp.ones((embed_dim,), jnp.float32),
            "ln1_b": jnp.zeros((embed_dim,), jnp.float32),
            "ln2_g": jnp.ones((embed_dim,), jnp.float32),
            "ln2_b": jnp.zeros((embed_dim,), jnp.float32),
        }
        encoders.append(p)
    return encoders


if __name__ == "__main__":
    # args: encoder_embed_dim=32, encoder_ffn_embed_dim=64, encoder_attention_heads=4,
    #       encoder_normalize_before=False, dropout=0 (eval), activation_fn='relu'
    T, B, E, H, F = 8, 2, 32, 4, 64
    key = jax.random.PRNGKey(0)
    k_x, k_p = jax.random.split(key)

    x = jax.random.normal(k_x, (T, B, E), jnp.float32)          # (seq_len, batch, embed)
    encoder_padding_mask = jnp.zeros((B, T), jnp.int32)
    encoder_padding_mask = encoder_padding_mask.at[1, T - 2:].set(1)  # pad last 2 of batch 1

    encoders = make_params(k_p, E, F, H, num_encoders=4)
    index = 1  # which of the 4 cluster encoders to run (forward arg `index`)
    params = encoders[index]

    # ---- attn_mask=None path (specialized kernel: no (T,T) bias input) ----
    fwd = jax.jit(lambda xx, mm: encoder_layer_forward(xx, mm, params, attn_mask=None))
    out = jax.block_until_ready(fwd(x, encoder_padding_mask))
    assert out.shape == (T, B, E) and out.dtype == jnp.float32
    assert bool(jnp.all(jnp.isfinite(out)))
    ref = _reference_forward(x, encoder_padding_mask, params, attn_mask=None)
    max_err = float(jnp.max(jnp.abs(out - ref)))
    assert max_err < 1e-3, f"mismatch vs reference (no attn_mask): {max_err}"

    # ---- attn_mask path ----
    attn_mask = jnp.triu(jnp.ones((T, T), jnp.int32), k=1)       # strided/causal-style mask
    fwd_m = jax.jit(
        lambda xx, mm: encoder_layer_forward(xx, mm, params, attn_mask=attn_mask))
    out_m = jax.block_until_ready(fwd_m(x, encoder_padding_mask))
    assert bool(jnp.all(jnp.isfinite(out_m)))
    ref_m = _reference_forward(x, encoder_padding_mask, params, attn_mask=attn_mask)
    max_err_m = float(jnp.max(jnp.abs(out_m - ref_m)))
    assert max_err_m < 1e-3, f"mismatch vs reference (attn_mask): {max_err_m}"

    print("KERNEL_OK")
</pallas_src>

<mosaic_0001>
module attributes {stable_mosaic.version = 11 : i64} {
  func.func @kernel(%arg0: i32, %arg1: memref<16x32xf32, #tpu.memory_space<vmem>>, %arg2: memref<2x1x8xf32, #tpu.memory_space<vmem>>, %arg3: memref<32x96xf32, #tpu.memory_space<vmem>>, %arg4: memref<1x96xf32, #tpu.memory_space<vmem>>, %arg5: memref<32x32xf32, #tpu.memory_space<vmem>>, %arg6: memref<1x32xf32, #tpu.memory_space<vmem>>, %arg7: memref<1x32xf32, #tpu.memory_space<vmem>>, %arg8: memref<1x32xf32, #tpu.memory_space<vmem>>, %arg9: memref<32x64xf32, #tpu.memory_space<vmem>>, %arg10: memref<1x64xf32, #tpu.memory_space<vmem>>, %arg11: memref<64x32xf32, #tpu.memory_space<vmem>>, %arg12: memref<1x32xf32, #tpu.memory_space<vmem>>, %arg13: memref<1x32xf32, #tpu.memory_space<vmem>>, %arg14: memref<1x32xf32, #tpu.memory_space<vmem>>, %arg15: memref<16x32xf32, #tpu.memory_space<vmem>>) attributes {dimension_semantics = [#tpu.dimension_semantics<arbitrary>], iteration_bounds = array<i64: 1>, scalar_prefetch = 0 : i64, scratch_operands = 0 : i64, tpu.core_type = #tpu.core_type<tc>, window_params = [{pipeline_mode = #tpu.pipeline_mode<synchronous>, transform_indices = @transform_0, window_bounds = array<i64: 16, 32>}, {pipeline_mode = #tpu.pipeline_mode<synchronous>, transform_indices = @transform_1, window_bounds = array<i64: 2, 1, 8>}, {pipeline_mode = #tpu.pipeline_mode<synchronous>, transform_indices = @transform_2, window_bounds = array<i64: 32, 96>}, {pipeline_mode = #tpu.pipeline_mode<synchronous>, transform_indices = @transform_3, window_bounds = array<i64: 1, 96>}, {pipeline_mode = #tpu.pipeline_mode<synchronous>, transform_indices = @transform_4, window_bounds = array<i64: 32, 32>}, {pipeline_mode = #tpu.pipeline_mode<synchronous>, transform_indices = @transform_5, window_bounds = array<i64: 1, 32>}, {pipeline_mode = #tpu.pipeline_mode<synchronous>, transform_indices = @transform_6, window_bounds = array<i64: 1, 32>}, {pipeline_mode = #tpu.pipeline_mode<synchronous>, transform_indices = @transform_7, window_bounds = array<i64: 1, 32>}, {pipeline_mode = #tpu.pipeline_mode<synchronous>, transform_indices = @transform_8, window_bounds = array<i64: 32, 64>}, {pipeline_mode = #tpu.pipeline_mode<synchronous>, transform_indices = @transform_9, window_bounds = array<i64: 1, 64>}, {pipeline_mode = #tpu.pipeline_mode<synchronous>, transform_indices = @transform_10, window_bounds = array<i64: 64, 32>}, {pipeline_mode = #tpu.pipeline_mode<synchronous>, transform_indices = @transform_11, window_bounds = array<i64: 1, 32>}, {pipeline_mode = #tpu.pipeline_mode<synchronous>, transform_indices = @transform_12, window_bounds = array<i64: 1, 32>}, {pipeline_mode = #tpu.pipeline_mode<synchronous>, transform_indices = @transform_13, window_bounds = array<i64: 1, 32>}, {pipeline_mode = #tpu.pipeline_mode<synchronous>, transform_indices = @transform_14, window_bounds = array<i64: 16, 32>}]} {
    %c0 = arith.constant 0 : index
    %c0_0 = arith.constant 0 : index
    %0 = vector.load %arg1[%c0, %c0_0] : memref<16x32xf32, #tpu.memory_space<vmem>>, vector<16x32xf32>
    %c0_1 = arith.constant 0 : index
    %c0_2 = arith.constant 0 : index
    %1 = vector.load %arg3[%c0_1, %c0_2] : memref<32x96xf32, #tpu.memory_space<vmem>>, vector<32x96xf32>
    %cst = arith.constant dense<0.000000e+00> : vector<16x96xf32>
    %2 = tpu.matmul %0, %1, %cst {dimension_numbers = #tpu.dot_dimension_numbers<[1], [0], [0], [1], [0, 0, 1, 1], [], []>} : vector<16x32xf32>, vector<32x96xf32>, vector<16x96xf32> -> vector<16x96xf32>
    %c0_3 = arith.constant 0 : index
    %c0_4 = arith.constant 0 : index
    %3 = vector.load %arg4[%c0_3, %c0_4] : memref<1x96xf32, #tpu.memory_space<vmem>>, vector<1x96xf32>
    %4 = vector.broadcast %3 : vector<1x96xf32> to vector<16x96xf32>
    %5 = arith.addf %2, %4 : vector<16x96xf32>
    %c0_5 = arith.constant 0 : index
    %c0_6 = arith.constant 0 : index
    %c0_7 = arith.constant 0 : index
    %6 = vector.load %arg2[%c0_5, %c0_6, %c0_7] : memref<2x1x8xf32, #tpu.memory_space<vmem>>, vector<1x1x8xf32>
    %7 = vector.shape_cast %6 : vector<1x1x8xf32> to vector<1x8xf32>
    %8 = vector.extract_strided_slice %5 {offsets = [0, 0], sizes = [8, 96], strides = [1, 1]} : vector<16x96xf32> to vector<8x96xf32>
    %9 = vector.extract_strided_slice %8 {offsets = [0, 0], sizes = [8, 8], strides = [1, 1]} : vector<8x96xf32> to vector<8x8xf32>
    %10 = vector.extract_strided_slice %8 {offsets = [0, 32], sizes = [8, 8], strides = [1, 1]} : vector<8x96xf32> to vector<8x8xf32>
    %11 = vector.extract_strided_slice %8 {offsets = [0, 64], sizes = [8, 8], strides = [1, 1]} : vector<8x96xf32> to vector<8x8xf32>
    %12 = tpu.transpose %10, [1, 0] : vector<8x8xf32> -> vector<8x8xf32>
    %cst_8 = arith.constant dense<0.000000e+00> : vector<8x8xf32>
    %13 = tpu.matmul %9, %12, %cst_8 {dimension_numbers = #tpu.dot_dimension_numbers<[1], [0], [0], [1], [0, 0, 1, 1], [], []>} : vector<8x8xf32>, vector<8x8xf32>, vector<8x8xf32> -> vector<8x8xf32>
    %14 = vector.broadcast %7 : vector<1x8xf32> to vector<8x8xf32>
    %15 = arith.addf %13, %14 : vector<8x8xf32>
    %cst_9 = arith.constant dense<0xFF800000> : vector<8xf32>
    %16 = vector.multi_reduction <maximumf>, %15, %cst_9 [1] : vector<8x8xf32> to vector<8xf32>
    %17 = vector.shape_cast %16 : vector<8xf32> to vector<8x1xf32>
    %18 = vector.broadcast %17 : vector<8x1xf32> to vector<8x8xf32>
    %19 = arith.subf %15, %18 : vector<8x8xf32>
    %20 = math.exp %19 : vector<8x8xf32>
    %cst_10 = arith.constant dense<0.000000e+00> : vector<8xf32>
    %21 = vector.multi_reduction <add>, %20, %cst_10 [1] : vector<8x8xf32> to vector<8xf32>
    %22 = vector.shape_cast %21 : vector<8xf32> to vector<8x1xf32>
    %cst_11 = arith.constant dense<0.000000e+00> : vector<8x8xf32>
    %23 = tpu.matmul %20, %11, %cst_11 {dimension_numbers = #tpu.dot_dimension_numbers<[1], [0], [0], [1], [0, 0, 1, 1], [], []>} : vector<8x8xf32>, vector<8x8xf32>, vector<8x8xf32> -> vector<8x8xf32>
    %24 = tpu.reciprocal %22 : vector<8x1xf32> -> vector<8x1xf32>
    %25 = vector.broadcast %24 : vector<8x1xf32> to vector<8x8xf32>
    %26 = arith.mulf %23, %25 : vector<8x8xf32>
    %27 = vector.extract_strided_slice %8 {offsets = [0, 8], sizes = [8, 8], strides = [1, 1]} : vector<8x96xf32> to vector<8x8xf32>
    %28 = vector.extract_strided_slice %8 {offsets = [0, 40], sizes = [8, 8], strides = [1, 1]} : vector<8x96xf32> to vector<8x8xf32>
    %29 = vector.extract_strided_slice %8 {offsets = [0, 72], sizes = [8, 8], strides = [1, 1]} : vector<8x96xf32> to vector<8x8xf32>
    %30 = tpu.transpose %28, [1, 0] : vector<8x8xf32> -> vector<8x8xf32>
    %cst_12 = arith.constant dense<0.000000e+00> : vector<8x8xf32>
    %31 = tpu.matmul %27, %30, %cst_12 {dimension_numbers = #tpu.dot_dimension_numbers<[1], [0], [0], [1], [0, 0, 1, 1], [], []>} : vector<8x8xf32>, vector<8x8xf32>, vector<8x8xf32> -> vector<8x8xf32>
    %32 = vector.broadcast %7 : vector<1x8xf32> to vector<8x8xf32>
    %33 = arith.addf %31, %32 : vector<8x8xf32>
    %cst_13 = arith.constant dense<0xFF800000> : vector<8xf32>
    %34 = vector.multi_reduction <maximumf>, %33, %cst_13 [1] : vector<8x8xf32> to vector<8xf32>
    %35 = vector.shape_cast %34 : vector<8xf32> to vector<8x1xf32>
    %36 = vector.broadcast %35 : vector<8x1xf32> to vector<8x8xf32>
    %37 = arith.subf %33, %36 : vector<8x8xf32>
    %38 = math.exp %37 : vector<8x8xf32>
    %cst_14 = arith.constant dense<0.000000e+00> : vector<8xf32>
    %39 = vector.multi_reduction <add>, %38, %cst_14 [1] : vector<8x8xf32> to vector<8xf32>
    %40 = vector.shape_cast %39 : vector<8xf32> to vector<8x1xf32>
    %cst_15 = arith.constant dense<0.000000e+00> : vector<8x8xf32>
    %41 = tpu.matmul %38, %29, %cst_15 {dimension_numbers = #tpu.dot_dimension_numbers<[1], [0], [0], [1], [0, 0, 1, 1], [], []>} : vector<8x8xf32>, vector<8x8xf32>, vector<8x8xf32> -> vector<8x8xf32>
    %42 = tpu.reciprocal %40 : vector<8x1xf32> -> vector<8x1xf32>
    %43 = vector.broadcast %42 : vector<8x1xf32> to vector<8x8xf32>
    %44 = arith.mulf %41, %43 : vector<8x8xf32>
    %45 = vector.extract_strided_slice %8 {offsets = [0, 16], sizes = [8, 8], strides = [1, 1]} : vector<8x96xf32> to vector<8x8xf32>
    %46 = vector.extract_strided_slice %8 {offsets = [0, 48], sizes = [8, 8], strides = [1, 1]} : vector<8x96xf32> to vector<8x8xf32>
    %47 = vector.extract_strided_slice %8 {offsets = [0, 80], sizes = [8, 8], strides = [1, 1]} : vector<8x96xf32> to vector<8x8xf32>
    %48 = tpu.transpose %46, [1, 0] : vector<8x8xf32> -> vector<8x8xf32>
    %cst_16 = arith.constant dense<0.000000e+00> : vector<8x8xf32>
    %49 = tpu.matmul %45, %48, %cst_16 {dimension_numbers = #tpu.dot_dimension_numbers<[1], [0], [0], [1], [0, 0, 1, 1], [], []>} : vector<8x8xf32>, vector<8x8xf32>, vector<8x8xf32> -> vector<8x8xf32>
    %50 = vector.broadcast %7 : vector<1x8xf32> to vector<8x8xf32>
    %51 = arith.addf %49, %50 : vector<8x8xf32>
    %cst_17 = arith.constant dense<0xFF800000> : vector<8xf32>
    %52 = vector.multi_reduction <maximumf>, %51, %cst_17 [1] : vector<8x8xf32> to vector<8xf32>
    %53 = vector.shape_cast %52 : vector<8xf32> to vector<8x1xf32>
    %54 = vector.broadcast %53 : vector<8x1xf32> to vector<8x8xf32>
    %55 = arith.subf %51, %54 : vector<8x8xf32>
    %56 = math.exp %55 : vector<8x8xf32>
    %cst_18 = arith.constant dense<0.000000e+00> : vector<8xf32>
    %57 = vector.multi_reduction <add>, %56, %cst_18 [1] : vector<8x8xf32> to vector<8xf32>
    %58 = vector.shape_cast %57 : vector<8xf32> to vector<8x1xf32>
    %cst_19 = arith.constant dense<0.000000e+00> : vector<8x8xf32>
    %59 = tpu.matmul %56, %47, %cst_19 {dimension_numbers = #tpu.dot_dimension_numbers<[1], [0], [0], [1], [0, 0, 1, 1], [], []>} : vector<8x8xf32>, vector<8x8xf32>, vector<8x8xf32> -> vector<8x8xf32>
    %60 = tpu.reciprocal %58 : vector<8x1xf32> -> vector<8x1xf32>
    %61 = vector.broadcast %60 : vector<8x1xf32> to vector<8x8xf32>
    %62 = arith.mulf %59, %61 : vector<8x8xf32>
    %63 = vector.extract_strided_slice %8 {offsets = [0, 24], sizes = [8, 8], strides = [1, 1]} : vector<8x96xf32> to vector<8x8xf32>
    %64 = vector.extract_strided_slice %8 {offsets = [0, 56], sizes = [8, 8], strides = [1, 1]} : vector<8x96xf32> to vector<8x8xf32>
    %65 = vector.extract_strided_slice %8 {offsets = [0, 88], sizes = [8, 8], strides = [1, 1]} : vector<8x96xf32> to vector<8x8xf32>
    %66 = tpu.transpose %64, [1, 0] : vector<8x8xf32> -> vector<8x8xf32>
    %cst_20 = arith.constant dense<0.000000e+00> : vector<8x8xf32>
    %67 = tpu.matmul %63, %66, %cst_20 {dimension_numbers = #tpu.dot_dimension_numbers<[1], [0], [0], [1], [0, 0, 1, 1], [], []>} : vector<8x8xf32>, vector<8x8xf32>, vector<8x8xf32> -> vector<8x8xf32>
    %68 = vector.broadcast %7 : vector<1x8xf32> to vector<8x8xf32>
    %69 = arith.addf %67, %68 : vector<8x8xf32>
    %cst_21 = arith.constant dense<0xFF800000> : vector<8xf32>
    %70 = vector.multi_reduction <maximumf>, %69, %cst_21 [1] : vector<8x8xf32> to vector<8xf32>
    %71 = vector.shape_cast %70 : vector<8xf32> to vector<8x1xf32>
    %72 = vector.broadcast %71 : vector<8x1xf32> to vector<8x8xf32>
    %73 = arith.subf %69, %72 : vector<8x8xf32>
    %74 = math.exp %73 : vector<8x8xf32>
    %cst_22 = arith.constant dense<0.000000e+00> : vector<8xf32>
    %75 = vector.multi_reduction <add>, %74, %cst_22 [1] : vector<8x8xf32> to vector<8xf32>
    %76 = vector.shape_cast %75 : vector<8xf32> to vector<8x1xf32>
    %cst_23 = arith.constant dense<0.000000e+00> : vector<8x8xf32>
    %77 = tpu.matmul %74, %65, %cst_23 {dimension_numbers = #tpu.dot_dimension_numbers<[1], [0], [0], [1], [0, 0, 1, 1], [], []>} : vector<8x8xf32>, vector<8x8xf32>, vector<8x8xf32> -> vector<8x8xf32>
    %78 = tpu.reciprocal %76 : vector<8x1xf32> -> vector<8x1xf32>
    %79 = vector.broadcast %78 : vector<8x1xf32> to vector<8x8xf32>
    %80 = arith.mulf %77, %79 : vector<8x8xf32>
    %81 = tpu.concatenate %26, %44, %62, %80 in 1 : vector<8x8xf32>, vector<8x8xf32>, vector<8x8xf32>, vector<8x8xf32> -> vector<8x32xf32>
    %c1 = arith.constant 1 : index
    %c0_24 = arith.constant 0 : index
    %c0_25 = arith.constant 0 : index
    %82 = vector.load %arg2[%c1, %c0_24, %c0_25] : memref<2x1x8xf32, #tpu.memory_space<vmem>>, vector<1x1x8xf32>
    %83 = vector.shape_cast %82 : vector<1x1x8xf32> to vector<1x8xf32>
    %84 = vector.extract_strided_slice %5 {offsets = [8, 0], sizes = [8, 96], strides = [1, 1]} : vector<16x96xf32> to vector<8x96xf32>
    %85 = vector.extract_strided_slice %84 {offsets = [0, 0], sizes = [8, 8], strides = [1, 1]} : vector<8x96xf32> to vector<8x8xf32>
    %86 = vector.extract_strided_slice %84 {offsets = [0, 32], sizes = [8, 8], strides = [1, 1]} : vector<8x96xf32> to vector<8x8xf32>
    %87 = vector.extract_strided_slice %84 {offsets = [0, 64], sizes = [8, 8], strides = [1, 1]} : vector<8x96xf32> to vector<8x8xf32>
    %88 = tpu.transpose %86, [1, 0] : vector<8x8xf32> -> vector<8x8xf32>
    %cst_26 = arith.constant dense<0.000000e+00> : vector<8x8xf32>
    %89 = tpu.matmul %85, %88, %cst_26 {dimension_numbers = #tpu.dot_dimension_numbers<[1], [0], [0], [1], [0, 0, 1, 1], [], []>} : vector<8x8xf32>, vector<8x8xf32>, vector<8x8xf32> -> vector<8x8xf32>
    %90 = vector.broadcast %83 : vector<1x8xf32> to vector<8x8xf32>
    %91 = arith.addf %89, %90 : vector<8x8xf32>
    %cst_27 = arith.constant dense<0xFF800000> : vector<8xf32>
    %92 = vector.multi_reduction <maximumf>, %91, %cst_27 [1] : vector<8x8xf32> to vector<8xf32>
    %93 = vector.shape_cast %92 : vector<8xf32> to vector<8x1xf32>
    %94 = vector.broadcast %93 : vector<8x1xf32> to vector<8x8xf32>
    %95 = arith.subf %91, %94 : vector<8x8xf32>
    %96 = math.exp %95 : vector<8x8xf32>
    %cst_28 = arith.constant dense<0.000000e+00> : vector<8xf32>
    %97 = vector.multi_reduction <add>, %96, %cst_28 [1] : vector<8x8xf32> to vector<8xf32>
    %98 = vector.shape_cast %97 : vector<8xf32> to vector<8x1xf32>
    %cst_29 = arith.constant dense<0.000000e+00> : vector<8x8xf32>
    %99 = tpu.matmul %96, %87, %cst_29 {dimension_numbers = #tpu.dot_dimension_numbers<[1], [0], [0], [1], [0, 0, 1, 1], [], []>} : vector<8x8xf32>, vector<8x8xf32>, vector<8x8xf32> -> vector<8x8xf32>
    %100 = tpu.reciprocal %98 : vector<8x1xf32> -> vector<8x1xf32>
    %101 = vector.broadcast %100 : vector<8x1xf32> to vector<8x8xf32>
    %102 = arith.mulf %99, %101 : vector<8x8xf32>
    %103 = vector.extract_strided_slice %84 {offsets = [0, 8], sizes = [8, 8], strides = [1, 1]} : vector<8x96xf32> to vector<8x8xf32>
    %104 = vector.extract_strided_slice %84 {offsets = [0, 40], sizes = [8, 8], strides = [1, 1]} : vector<8x96xf32> to vector<8x8xf32>
    %105 = vector.extract_strided_slice %84 {offsets = [0, 72], sizes = [8, 8], strides = [1, 1]} : vector<8x96xf32> to vector<8x8xf32>
    %106 = tpu.transpose %104, [1, 0] : vector<8x8xf32> -> vector<8x8xf32>
    %cst_30 = arith.constant dense<0.000000e+00> : vector<8x8xf32>
    %107 = tpu.matmul %103, %106, %cst_30 {dimension_numbers = #tpu.dot_dimension_numbers<[1], [0], [0], [1], [0, 0, 1, 1], [], []>} : vector<8x8xf32>, vector<8x8xf32>, vector<8x8xf32> -> vector<8x8xf32>
    %108 = vector.broadcast %83 : vector<1x8xf32> to vector<8x8xf32>
    %109 = arith.addf %107, %108 : vector<8x8xf32>
    %cst_31 = arith.constant dense<0xFF800000> : vector<8xf32>
    %110 = vector.multi_reduction <maximumf>, %109, %cst_31 [1] : vector<8x8xf32> to vector<8xf32>
    %111 = vector.shape_cast %110 : vector<8xf32> to vector<8x1xf32>
    %112 = vector.broadcast %111 : vector<8x1xf32> to vector<8x8xf32>
    %113 = arith.subf %109, %112 : vector<8x8xf32>
    %114 = math.exp %113 : vector<8x8xf32>
    %cst_32 = arith.constant dense<0.000000e+00> : vector<8xf32>
    %115 = vector.multi_reduction <add>, %114, %cst_32 [1] : vector<8x8xf32> to vector<8xf32>
    %116 = vector.shape_cast %115 : vector<8xf32> to vector<8x1xf32>
    %cst_33 = arith.constant dense<0.000000e+00> : vector<8x8xf32>
    %117 = tpu.matmul %114, %105, %cst_33 {dimension_numbers = #tpu.dot_dimension_numbers<[1], [0], [0], [1], [0, 0, 1, 1], [], []>} : vector<8x8xf32>, vector<8x8xf32>, vector<8x8xf32> -> vector<8x8xf32>
    %118 = tpu.reciprocal %116 : vector<8x1xf32> -> vector<8x1xf32>
    %119 = vector.broadcast %118 : vector<8x1xf32> to vector<8x8xf32>
    %120 = arith.mulf %117, %119 : vector<8x8xf32>
    %121 = vector.extract_strided_slice %84 {offsets = [0, 16], sizes = [8, 8], strides = [1, 1]} : vector<8x96xf32> to vector<8x8xf32>
    %122 = vector.extract_strided_slice %84 {offsets = [0, 48], sizes = [8, 8], strides = [1, 1]} : vector<8x96xf32> to vector<8x8xf32>
    %123 = vector.extract_strided_slice %84 {offsets = [0, 80], sizes = [8, 8], strides = [1, 1]} : vector<8x96xf32> to vector<8x8xf32>
    %124 = tpu.transpose %122, [1, 0] : vector<8x8xf32> -> vector<8x8xf32>
    %cst_34 = arith.constant dense<0.000000e+00> : vector<8x8xf32>
    %125 = tpu.matmul %121, %124, %cst_34 {dimension_numbers = #tpu.dot_dimension_numbers<[1], [0], [0], [1], [0, 0, 1, 1], [], []>} : vector<8x8xf32>, vector<8x8xf32>, vector<8x8xf32> -> vector<8x8xf32>
    %126 = vector.broadcast %83 : vector<1x8xf32> to vector<8x8xf32>
    %127 = arith.addf %125, %126 : vector<8x8xf32>
    %cst_35 = arith.constant dense<0xFF800000> : vector<8xf32>
    %128 = vector.multi_reduction <maximumf>, %127, %cst_35 [1] : vector<8x8xf32> to vector<8xf32>
    %129 = vector.shape_cast %128 : vector<8xf32> to vector<8x1xf32>
    %130 = vector.broadcast %129 : vector<8x1xf32> to vector<8x8xf32>
    %131 = arith.subf %127, %130 : vector<8x8xf32>
    %132 = math.exp %131 : vector<8x8xf32>
    %cst_36 = arith.constant dense<0.000000e+00> : vector<8xf32>
    %133 = vector.multi_reduction <add>, %132, %cst_36 [1] : vector<8x8xf32> to vector<8xf32>
    %134 = vector.shape_cast %133 : vector<8xf32> to vector<8x1xf32>
    %cst_37 = arith.constant dense<0.000000e+00> : vector<8x8xf32>
    %135 = tpu.matmul %132, %123, %cst_37 {dimension_numbers = #tpu.dot_dimension_numbers<[1], [0], [0], [1], [0, 0, 1, 1], [], []>} : vector<8x8xf32>, vector<8x8xf32>, vector<8x8xf32> -> vector<8x8xf32>
    %136 = tpu.reciprocal %134 : vector<8x1xf32> -> vector<8x1xf32>
    %137 = vector.broadcast %136 : vector<8x1xf32> to vector<8x8xf32>
    %138 = arith.mulf %135, %137 : vector<8x8xf32>
    %139 = vector.extract_strided_slice %84 {offsets = [0, 24], sizes = [8, 8], strides = [1, 1]} : vector<8x96xf32> to vector<8x8xf32>
    %140 = vector.extract_strided_slice %84 {offsets = [0, 56], sizes = [8, 8], strides = [1, 1]} : vector<8x96xf32> to vector<8x8xf32>
    %141 = vector.extract_strided_slice %84 {offsets = [0, 88], sizes = [8, 8], strides = [1, 1]} : vector<8x96xf32> to vector<8x8xf32>
    %142 = tpu.transpose %140, [1, 0] : vector<8x8xf32> -> vector<8x8xf32>
    %cst_38 = arith.constant dense<0.000000e+00> : vector<8x8xf32>
    %143 = tpu.matmul %139, %142, %cst_38 {dimension_numbers = #tpu.dot_dimension_numbers<[1], [0], [0], [1], [0, 0, 1, 1], [], []>} : vector<8x8xf32>, vector<8x8xf32>, vector<8x8xf32> -> vector<8x8xf32>
    %144 = vector.broadcast %83 : vector<1x8xf32> to vector<8x8xf32>
    %145 = arith.addf %143, %144 : vector<8x8xf32>
    %cst_39 = arith.constant dense<0xFF800000> : vector<8xf32>
    %146 = vector.multi_reduction <maximumf>, %145, %cst_39 [1] : vector<8x8xf32> to vector<8xf32>
    %147 = vector.shape_cast %146 : vector<8xf32> to vector<8x1xf32>
    %148 = vector.broadcast %147 : vector<8x1xf32> to vector<8x8xf32>
    %149 = arith.subf %145, %148 : vector<8x8xf32>
    %150 = math.exp %149 : vector<8x8xf32>
    %cst_40 = arith.constant dense<0.000000e+00> : vector<8xf32>
    %151 = vector.multi_reduction <add>, %150, %cst_40 [1] : vector<8x8xf32> to vector<8xf32>
    %152 = vector.shape_cast %151 : vector<8xf32> to vector<8x1xf32>
    %cst_41 = arith.constant dense<0.000000e+00> : vector<8x8xf32>
    %153 = tpu.matmul %150, %141, %cst_41 {dimension_numbers = #tpu.dot_dimension_numbers<[1], [0], [0], [1], [0, 0, 1, 1], [], []>} : vector<8x8xf32>, vector<8x8xf32>, vector<8x8xf32> -> vector<8x8xf32>
    %154 = tpu.reciprocal %152 : vector<8x1xf32> -> vector<8x1xf32>
    %155 = vector.broadcast %154 : vector<8x1xf32> to vector<8x8xf32>
    %156 = arith.mulf %153, %155 : vector<8x8xf32>
    %157 = tpu.concatenate %102, %120, %138, %156 in 1 : vector<8x8xf32>, vector<8x8xf32>, vector<8x8xf32>, vector<8x8xf32> -> vector<8x32xf32>
    %158 = tpu.concatenate %81, %157 in 0 : vector<8x32xf32>, vector<8x32xf32> -> vector<16x32xf32>
    %c0_42 = arith.constant 0 : index
    %c0_43 = arith.constant 0 : index
    %159 = vector.load %arg5[%c0_42, %c0_43] : memref<32x32xf32, #tpu.memory_space<vmem>>, vector<32x32xf32>
    %cst_44 = arith.constant dense<0.000000e+00> : vector<16x32xf32>
    %160 = tpu.matmul %158, %159, %cst_44 {dimension_numbers = #tpu.dot_dimension_numbers<[1], [0], [0], [1], [0, 0, 1, 1], [], []>} : vector<16x32xf32>, vector<32x32xf32>, vector<16x32xf32> -> vector<16x32xf32>
    %c0_45 = arith.constant 0 : index
    %c0_46 = arith.constant 0 : index
    %161 = vector.load %arg6[%c0_45, %c0_46] : memref<1x32xf32, #tpu.memory_space<vmem>>, vector<1x32xf32>
    %162 = vector.broadcast %161 : vector<1x32xf32> to vector<16x32xf32>
    %163 = arith.addf %160, %162 : vector<16x32xf32>
    %164 = arith.addf %163, %0 : vector<16x32xf32>
    %cst_47 = arith.constant dense<0.000000e+00> : vector<16xf32>
    %165 = vector.multi_reduction <add>, %164, %cst_47 [1] : vector<16x32xf32> to vector<16xf32>
    %166 = vector.shape_cast %165 : vector<16xf32> to vector<16x1xf32>
    %cst_48 = arith.constant 3.200000e+01 : f32
    %167 = vector.broadcast %cst_48 : f32 to vector<16x1xf32>
    %168 = arith.divf %166, %167 : vector<16x1xf32>
    %169 = vector.broadcast %168 : vector<16x1xf32> to vector<16x32xf32>
    %170 = arith.subf %164, %169 : vector<16x32xf32>
    %171 = arith.mulf %170, %170 : vector<16x32xf32>
    %cst_49 = arith.constant dense<0.000000e+00> : vector<16xf32>
    %172 = vector.multi_reduction <add>, %171, %cst_49 [1] : vector<16x32xf32> to vector<16xf32>
    %173 = vector.shape_cast %172 : vector<16xf32> to vector<16x1xf32>
    %cst_50 = arith.constant 3.200000e+01 : f32
    %174 = vector.broadcast %cst_50 : f32 to vector<16x1xf32>
    %175 = arith.divf %173, %174 : vector<16x1xf32>
    %cst_51 = arith.constant 9.99999974E-6 : f32
    %176 = vector.broadcast %cst_51 : f32 to vector<16x1xf32>
    %177 = arith.addf %175, %176 : vector<16x1xf32>
    %178 = math.rsqrt %177 : vector<16x1xf32>
    %179 = vector.broadcast %178 : vector<16x1xf32> to vector<16x32xf32>
    %180 = arith.mulf %170, %179 : vector<16x32xf32>
    %c0_52 = arith.constant 0 : index
    %c0_53 = arith.constant 0 : index
    %181 = vector.load %arg7[%c0_52, %c0_53] : memref<1x32xf32, #tpu.memory_space<vmem>>, vector<1x32xf32>
    %182 = vector.broadcast %181 : vector<1x32xf32> to vector<16x32xf32>
    %183 = arith.mulf %180, %182 : vector<16x32xf32>
    %c0_54 = arith.constant 0 : index
    %c0_55 = arith.constant 0 : index
    %184 = vector.load %arg8[%c0_54, %c0_55] : memref<1x32xf32, #tpu.memory_space<vmem>>, vector<1x32xf32>
    %185 = vector.broadcast %184 : vector<1x32xf32> to vector<16x32xf32>
    %186 = arith.addf %183, %185 : vector<16x32xf32>
    %c0_56 = arith.constant 0 : index
    %c0_57 = arith.constant 0 : index
    %187 = vector.load %arg9[%c0_56, %c0_57] : memref<32x64xf32, #tpu.memory_space<vmem>>, vector<32x64xf32>
    %cst_58 = arith.constant dense<0.000000e+00> : vector<16x64xf32>
    %188 = tpu.matmul %186, %187, %cst_58 {dimension_numbers = #tpu.dot_dimension_numbers<[1], [0], [0], [1], [0, 0, 1, 1], [], []>} : vector<16x32xf32>, vector<32x64xf32>, vector<16x64xf32> -> vector<16x64xf32>
    %c0_59 = arith.constant 0 : index
    %c0_60 = arith.constant 0 : index
    %189 = vector.load %arg10[%c0_59, %c0_60] : memref<1x64xf32, #tpu.memory_space<vmem>>, vector<1x64xf32>
    %190 = vector.broadcast %189 : vector<1x64xf32> to vector<16x64xf32>
    %191 = arith.addf %188, %190 : vector<16x64xf32>
    %cst_61 = arith.constant 0.000000e+00 : f32
    %192 = vector.broadcast %cst_61 : f32 to vector<16x64xf32>
    %193 = arith.maximumf %191, %192 : vector<16x64xf32>
    %c0_62 = arith.constant 0 : index
    %c0_63 = arith.constant 0 : index
    %194 = vector.load %arg11[%c0_62, %c0_63] : memref<64x32xf32, #tpu.memory_space<vmem>>, vector<64x32xf32>
    %cst_64 = arith.constant dense<0.000000e+00> : vector<16x32xf32>
    %195 = tpu.matmul %193, %194, %cst_64 {dimension_numbers = #tpu.dot_dimension_numbers<[1], [0], [0], [1], [0, 0, 1, 1], [], []>} : vector<16x64xf32>, vector<64x32xf32>, vector<16x32xf32> -> vector<16x32xf32>
    %c0_65 = arith.constant 0 : index
    %c0_66 = arith.constant 0 : index
    %196 = vector.load %arg12[%c0_65, %c0_66] : memref<1x32xf32, #tpu.memory_space<vmem>>, vector<1x32xf32>
    %197 = vector.broadcast %196 : vector<1x32xf32> to vector<16x32xf32>
    %198 = arith.addf %195, %197 : vector<16x32xf32>
    %199 = arith.addf %198, %186 : vector<16x32xf32>
    %cst_67 = arith.constant dense<0.000000e+00> : vector<16xf32>
    %200 = vector.multi_reduction <add>, %199, %cst_67 [1] : vector<16x32xf32> to vector<16xf32>
    %201 = vector.shape_cast %200 : vector<16xf32> to vector<16x1xf32>
    %cst_68 = arith.constant 3.200000e+01 : f32
    %202 = vector.broadcast %cst_68 : f32 to vector<16x1xf32>
    %203 = arith.divf %201, %202 : vector<16x1xf32>
    %204 = vector.broadcast %203 : vector<16x1xf32> to vector<16x32xf32>
    %205 = arith.subf %199, %204 : vector<16x32xf32>
    %206 = arith.mulf %205, %205 : vector<16x32xf32>
    %cst_69 = arith.constant dense<0.000000e+00> : vector<16xf32>
    %207 = vector.multi_reduction <add>, %206, %cst_69 [1] : vector<16x32xf32> to vector<16xf32>
    %208 = vector.shape_cast %207 : vector<16xf32> to vector<16x1xf32>
    %cst_70 = arith.constant 3.200000e+01 : f32
    %209 = vector.broadcast %cst_70 : f32 to vector<16x1xf32>
    %210 = arith.divf %208, %209 : vector<16x1xf32>
    %cst_71 = arith.constant 9.99999974E-6 : f32
    %211 = vector.broadcast %cst_71 : f32 to vector<16x1xf32>
    %212 = arith.addf %210, %211 : vector<16x1xf32>
    %213 = math.rsqrt %212 : vector<16x1xf32>
    %214 = vector.broadcast %213 : vector<16x1xf32> to vector<16x32xf32>
    %215 = arith.mulf %205, %214 : vector<16x32xf32>
    %c0_72 = arith.constant 0 : index
    %c0_73 = arith.constant 0 : index
    %216 = vector.load %arg13[%c0_72, %c0_73] : memref<1x32xf32, #tpu.memory_space<vmem>>, vector<1x32xf32>
    %217 = vector.broadcast %216 : vector<1x32xf32> to vector<16x32xf32>
    %218 = arith.mulf %215, %217 : vector<16x32xf32>
    %c0_74 = arith.constant 0 : index
    %c0_75 = arith.constant 0 : index
    %219 = vector.load %arg14[%c0_74, %c0_75] : memref<1x32xf32, #tpu.memory_space<vmem>>, vector<1x32xf32>
    %220 = vector.broadcast %219 : vector<1x32xf32> to vector<16x32xf32>
    %221 = arith.addf %218, %220 : vector<16x32xf32>
    %c0_76 = arith.constant 0 : index
    %c0_77 = arith.constant 0 : index
    %222 = vector.load %arg15[%c0_76, %c0_77] : memref<16x32xf32, #tpu.memory_space<vmem>>, vector<16x32xf32>
    tpu.vector_store %arg15[%c0_76, %c0_77], %221 {strides = array<i32>} : memref<16x32xf32, #tpu.memory_space<vmem>>, vector<16x32xf32>,
    return
  }
  func.func @transform_0(%arg0: i32) -> (i32, i32) {
    %c0_i32 = arith.constant 0 : i32
    %c0_i32_0 = arith.constant 0 : i32
    %c0_i32_1 = arith.constant 0 : i32
    return %c0_i32, %c0_i32_0 : i32, i32
  }
  func.func @transform_1(%arg0: i32) -> (i32, i32, i32) {
    %c0_i32 = arith.constant 0 : i32
    %c0_i32_0 = arith.constant 0 : i32
    %c0_i32_1 = arith.constant 0 : i32
    %c0_i32_2 = arith.constant 0 : i32
    return %c0_i32, %c0_i32_0, %c0_i32_1 : i32, i32, i32
  }
  func.func @transform_2(%arg0: i32) -> (i32, i32) {
    %c0_i32 = arith.constant 0 : i32
    %c0_i32_0 = arith.constant 0 : i32
    %c0_i32_1 = arith.constant 0 : i32
    return %c0_i32, %c0_i32_0 : i32, i32
  }
  func.func @transform_3(%arg0: i32) -> (i32, i32) {
    %c0_i32 = arith.constant 0 : i32
    %c0_i32_0 = arith.constant 0 : i32
    %c0_i32_1 = arith.constant 0 : i32
    return %c0_i32, %c0_i32_0 : i32, i32
  }
  func.func @transform_4(%arg0: i32) -> (i32, i32) {
    %c0_i32 = arith.constant 0 : i32
    %c0_i32_0 = arith.constant 0 : i32
    %c0_i32_1 = arith.constant 0 : i32
    return %c0_i32, %c0_i32_0 : i32, i32
  }
  func.func @transform_5(%arg0: i32) -> (i32, i32) {
    %c0_i32 = arith.constant 0 : i32
    %c0_i32_0 = arith.constant 0 : i32
    %c0_i32_1 = arith.constant 0 : i32
    return %c0_i32, %c0_i32_0 : i32, i32
  }
  func.func @transform_6(%arg0: i32) -> (i32, i32) {
    %c0_i32 = arith.constant 0 : i32
    %c0_i32_0 = arith.constant 0 : i32
    %c0_i32_1 = arith.constant 0 : i32
    return %c0_i32, %c0_i32_0 : i32, i32
  }
  func.func @transform_7(%arg0: i32) -> (i32, i32) {
    %c0_i32 = arith.constant 0 : i32
    %c0_i32_0 = arith.constant 0 : i32
    %c0_i32_1 = arith.constant 0 : i32
    return %c0_i32, %c0_i32_0 : i32, i32
  }
  func.func @transform_8(%arg0: i32) -> (i32, i32) {
    %c0_i32 = arith.constant 0 : i32
    %c0_i32_0 = arith.constant 0 : i32
    %c0_i32_1 = arith.constant 0 : i32
    return %c0_i32, %c0_i32_0 : i32, i32
  }
  func.func @transform_9(%arg0: i32) -> (i32, i32) {
    %c0_i32 = arith.constant 0 : i32
    %c0_i32_0 = arith.constant 0 : i32
    %c0_i32_1 = arith.constant 0 : i32
    return %c0_i32, %c0_i32_0 : i32, i32
  }
  func.func @transform_10(%arg0: i32) -> (i32, i32) {
    %c0_i32 = arith.constant 0 : i32
    %c0_i32_0 = arith.constant 0 : i32
    %c0_i32_1 = arith.constant 0 : i32
    return %c0_i32, %c0_i32_0 : i32, i32
  }
  func.func @transform_11(%arg0: i32) -> (i32, i32) {
    %c0_i32 = arith.constant 0 : i32
    %c0_i32_0 = arith.constant 0 : i32
    %c0_i32_1 = arith.constant 0 : i32
    return %c0_i32, %c0_i32_0 : i32, i32
  }
  func.func @transform_12(%arg0: i32) -> (i32, i32) {
    %c0_i32 = arith.constant 0 : i32
    %c0_i32_0 = arith.constant 0 : i32
    %c0_i32_1 = arith.constant 0 : i32
    return %c0_i32, %c0_i32_0 : i32, i32
  }
  func.func @transform_13(%arg0: i32) -> (i32, i32) {
    %c0_i32 = arith.constant 0 : i32
    %c0_i32_0 = arith.constant 0 : i32
    %c0_i32_1 = arith.constant 0 : i32
    return %c0_i32, %c0_i32_0 : i32, i32
  }
  func.func @transform_14(%arg0: i32) -> (i32, i32) {
    %c0_i32 = arith.constant 0 : i32
    %c0_i32_0 = arith.constant 0 : i32
    %c0_i32_1 = arith.constant 0 : i32
    return %c0_i32, %c0_i32_0 : i32, i32
  }
}

</mosaic_0001>

<bundles_post_ra>
// kernel: _lambda_.1
= control target key start
LH: loop header
LB: loop body
LE: loop exit
PB: predicated region body
PF: predicated region fallthrough
CT: control target
= control target key end

     0   :  { %19 = vsyncpa [#allocation3], 0  ;;  %s2713_s0 = inlined_call_operand.vmem [shape: f32[16,32], index: 0, kind: input, shape index: {}]   ;;  %s2714_s1 = inlined_call_operand.vmem [shape: f32[2,1,8], index: 1, kind: input, shape index: {}]   ;;  %s2715_s2 = inlined_call_operand.hbm [shape: f32[32,96], index: 2, kind: input, shape index: {}]   ;;  %s2716_s3 = inlined_call_operand.vmem [shape: f32[1,96], index: 3, kind: input, shape index: {}]   ;;  %s2717_s4 = inlined_call_operand.hbm [shape: f32[32,32], index: 4, kind: input, shape index: {}]   ;;  %s2718_s5 = inlined_call_operand.vmem [shape: f32[1,32], index: 5, kind: input, shape index: {}]   ;;  %s2719_s6 = inlined_call_operand.vmem [shape: f32[1,32], index: 6, kind: input, shape index: {}, may-alias: {6,12}]   ;;  %s2720_s7 = inlined_call_operand.vmem [shape: f32[1,32], index: 7, kind: input, shape index: {}, may-alias: {7,13}]   ;;  %s2721_s8 = inlined_call_operand.hbm [shape: f32[32,64], index: 8, kind: input, shape index: {}]   ;;  %s2722_s9 = inlined_call_operand.vmem [shape: f32[1,64], index: 9, kind: input, shape index: {}]   ;;  %s2723_s10 = inlined_call_operand.vmem [shape: f32[64,32], index: 10, kind: input, shape index: {}]   ;;  %s2724_s11 = inlined_call_operand.vmem [shape: f32[1,32], index: 11, kind: input, shape index: {}]   ;;  %s2725_s12 = inlined_call_operand.vmem [shape: f32[1,32], index: 12, kind: input, shape index: {}, may-alias: {6,12}]   ;;  %s2726_s13 = inlined_call_operand.vmem [shape: f32[1,32], index: 13, kind: input, shape index: {}, may-alias: {7,13}]   ;;  %s2727_s14 = inlined_call_operand.vmem [shape: f32[16,32], index: 14, kind: output, shape index: {}]  }
   0x1   :  { %20 = vsyncpa [#allocation5], 0  ;;  %s2338_s29 = smov [#allocation4]   ;;  %s2339_s15 = smov [#allocation2]  }
   0x2   :  { %s44_s30 = sshll.u32 %s2338_s29, 4  ;;  %s30_s16 = sshll.u32 %s2339_s15, 4  ;;  %s45_s30 = int_to_ptr.vmem [resolvable:$true] %s44_s30  ;;  %s2433_s16 = int_to_ptr.vmem [resolvable:$true] %s30_s16 }
   0x3   :  { %s2268_s19 = scalar_lea.hbm %s2717_s4, 512 }
   0x4   :  { %p2269_p0 = scmp.ne.s32.totalorder %s2717_s4, %s2268_s19  ;;  %p2272_p1 = scmp.lt.u32.totalorder %s2268_s19, %s2717_s4 }
   0x6   :  { %p2274_p2 = pnand %p2272_p1, %p2269_p0 }
   0x8   :  { %2277 = shalt.err (!%p2274_p2)
}
   0x9   :  { %s2278_s24 = scalar_lea.vmem %s45_s30, 512  ;;  %p2283_p4 = scmp.lt.s32.totalorder %s45_s30, %s45_s30 }
   0xa   :  { %p2279_p3 = scmp.ne.s32.totalorder %s45_s30, %s2278_s24  ;;  %p2284_p5 = scmp.lt.s32.totalorder %s2278_s24, %s2278_s24 }
   0xc   :  { %p2285_p6 = por %p2284_p5, %p2283_p4 }
   0xe   :  { %p2286_p7 = pnand %p2285_p6, %p2279_p3 }
  0x10   :  { %2289 = shalt.err (!%p2286_p7)
}
  0x11   :  { %s2340_s25 = smov 128   ;;  %s2341_s26 = smov 8  }
  0x12   :  { %50 = dma.hbm_to_vmem [thread:$0]  %s2717_s4, 512, %s45_s30, [#allocation5], %s2340_s25, %s2340_s25, %s2341_s26  }
  0x13   :  { %s2290_s17 = scalar_lea.hbm %s2715_s2, 512 }
  0x14   :  { %p2291_p8 = scmp.ne.s32.totalorder %s2715_s2, %s2290_s17  ;;  %p2294_p9 = scmp.lt.u32.totalorder %s2290_s17, %s2715_s2 }
  0x16   :  { %p2296_p10 = pnand %p2294_p9, %p2291_p8 }
  0x18   :  { %2299 = shalt.err (!%p2296_p10)
}
  0x19   :  { %s2300_s22 = scalar_lea.vmem %s2433_s16, 512  ;;  %p2305_p12 = scmp.lt.s32.totalorder %s2433_s16, %s2433_s16 }
  0x1a   :  { %p2301_p11 = scmp.ne.s32.totalorder %s2433_s16, %s2300_s22  ;;  %p2306_p13 = scmp.lt.s32.totalorder %s2300_s22, %s2300_s22 }
  0x1c   :  { %p2307_p0 = por %p2306_p13, %p2305_p12 }
  0x1e   :  { %p2308_p1 = pnand %p2307_p0, %p2301_p11 }
  0x20   :  { %2311 = shalt.err (!%p2308_p1)
}
  0x21   :  { %36 = dma.hbm_to_vmem [thread:$0]  %s2715_s2, 512, %s2433_s16, [#allocation3], %s2340_s25, %s2340_s25, %s2341_s26  }
  0x22   :  { %s2342_s23 = smov [#allocation6]   ;;  %s2312_s29 = scalar_lea.hbm %s2721_s8, 512 }
  0x23   :  { %s62_s24 = sshll.u32 %s2342_s23, 4  ;;  %p2313_p2 = scmp.ne.s32.totalorder %s2721_s8, %s2312_s29  ;;  %s63_s24 = int_to_ptr.vmem [resolvable:$true] %s62_s24 }
  0x24   :  { %p2316_p3 = scmp.lt.u32.totalorder %s2312_s29, %s2721_s8 }
  0x26   :  { %p2318_p4 = pnand %p2316_p3, %p2313_p2 }
  0x28   :  { %2321 = shalt.err (!%p2318_p4)
}
  0x29   :  { %s2322_s20 = scalar_lea.vmem %s63_s24, 512  ;;  %p2327_p6 = scmp.lt.s32.totalorder %s63_s24, %s63_s24 }
  0x2a   :  { %p2323_p5 = scmp.ne.s32.totalorder %s63_s24, %s2322_s20  ;;  %p2328_p7 = scmp.lt.s32.totalorder %s2322_s20, %s2322_s20 }
  0x2c   :  { %p2329_p8 = por %p2328_p7, %p2327_p6 }
  0x2e   :  { %p2330_p9 = pnand %p2329_p8, %p2323_p5 }
  0x30   :  { %2333 = shalt.err (!%p2330_p9)
}
  0x31   :  { %68 = dma.hbm_to_vmem [thread:$0]  %s2721_s8, 512, %s63_s24, [#allocation5], %s2340_s25, %s2340_s25, %s2341_s26  }
  0x32   :  { %2334 = dma.done.wait [#allocation3], 512  }
  0x33   :  { %2335 = vsyncadd [#allocation3], 4294966784 }
  0x34   :  { %2336 = dma.done.wait [#allocation5], 1024  }
  0x35   :  { %2337 = vsyncadd [#allocation5], 4294966272  ;;  %vm101_vm0 = vcmask 261120   ;;  %v90_v0 = vld [vmem:[#allocation2] sm:$0xff]  ;;  %v91_v1 = vld [vmem:[#allocation2 + $0x8] sm:$0xff]  ;;  %v2343_v8 = vmov 0.0  }
  0x36   :  { %v92_v2 = vld [vmem:[#allocation2 + $0x10] sm:$0xff]  ;;  %v2168_v3 = vpack.c.bf16 %v91_v1, %v90_v0  ;;  %v93_v4 = vld [vmem:[#allocation2 + $0x18] sm:$0xff]  ;;  %v2488_v5 = vld [vmem:[%s2713_s0] sm:$0xff]  ;;  %2057 = vmatprep.subr.mxu0 %v2343_v8  ;;  %vm2344_vm1 = vmmov 0   ;;  %s2346_s23 = smov 96   ;;  %s2347_s24 = smov 80  }
  0x37   :  { %v2172_v6 = vpack.c.bf16 %v93_v4, %v92_v2  ;;  %2044 = vmatprep.mubr.msk.f32.mxu1 %vm101_vm0, %v2488_v5  ;;  %v2495_v7 = vld [vmem:[%s2713_s0 + $0x8] sm:$0xff]  ;;  %2059 = vmatprep.mubr.msk.f32.mxu0 %vm2344_vm1, %v2343_v8  ;;  %v1933_v9 = vld [vmem:[%s2716_s3] ss:$0 sm:$0xff]  ;;  %s2345_s0 = smov 120   ;;  %s2348_s27 = smov 88   ;;  %vm193_vm2 = vcmask 64512  }
  0x38   :  { %2169 = vmatprep.subr.bf16.mxu1 %v2168_v3  ;;  %s2349_s28 = smov 72   ;;  %s2350_s3 = smov 112   ;;  %v1936_v29 = vld [vmem:[%s2714_s1] ss:$0 sm:$0xff]  ;;  %v1950_v42 = vld [vmem:[%s2714_s1 + $0x1] ss:$0 sm:$0xff] }
  0x39   :  { %2171 = vmatpush3.bf16.msra.mxu1 %v2168_v3  ;;  %s2351_s29 = smov 104   ;;  %s2352_s15 = smov 56   ;;  %vm863_vm3 = vcmask 130048   ;;  %vm865_vm4 = vcmask 195584   ;;  %vm1797_vm5 = vcmask 523264  }
  0x3a   :  { %2173 = vmatprep.subr.bf16.mxu1 %v2172_v6  ;;  %s2353_s17 = smov 64   ;;  %s2354_s18 = smov 40  }
  0x3b   :  { %s2355_s21 = smov 48   ;;  %s2356_s1 = smov 16  }
  0x3c   :  { %s2357_s22 = smov 24  }
  0x3d   :  { %2175 = vmatpush3.bf16.msra.mxu1 %v2172_v6 }
  0x3e   :  { %2047 = vmatprep.subr.mxu1 %v2343_v8 }
  0x40   :  { %2045 = vmatmul.mubr.msk.f32.vlgmr.msra.gmra.mrb[0].mxu1 %vm101_vm0, %v2495_v7 }
  0x41   :  { %2049 = vmatprep.mubr.msk.f32.mxu1 %vm2344_vm1, %v2343_v8 }
 0x113   :  { %v2046_v10 = vpop.f32.mrb[0].mxu1 }
 0x114   :  { %v174_v11 = vpop.f32.mrb[1].mxu1  ;;  %v2516_v13 = vadd.f32 %v2046_v10, %v1933_v9 }
 0x115   :  { %v2508_v12 = vadd.f32 %v1933_v9, %v174_v11 }
 0x117   :  { %355 = vrot.lane.b32.xlu1 %v2508_v12, %s2345_s0  ;;  %191 = vrot.lane.b32.xlu0 %v2508_v12, %s2346_s23 }
 0x11b   :  { %522 = vrot.lane.b32.xlu1 %v2508_v12, %s2347_s24  ;;  %357 = vrot.lane.b32.xlu0 %v2508_v12, %s2348_s27 }
 0x11f   :  { %687 = vrot.lane.b32.xlu1 %v2508_v12, %s2349_s28  ;;  %520 = vrot.lane.b32.xlu0 %v2508_v12, %s2350_s3 }
 0x123   :  { %876 = vrot.lane.b32.xlu1 %v2516_v13, %s2346_s23  ;;  %685 = vrot.lane.b32.xlu0 %v2508_v12, %s2351_s29 }
 0x127   :  { %1039 = vrot.lane.b32.xlu1 %v2516_v13, %s2345_s0  ;;  %1041 = vrot.lane.b32.xlu0 %v2516_v13, %s2348_s27 }
 0x12b   :  { %1204 = vrot.lane.b32.xlu1 %v2516_v13, %s2350_s3  ;;  %1206 = vrot.lane.b32.xlu0 %v2516_v13, %s2347_s24 }
 0x12f   :  { %1369 = vrot.lane.b32.xlu1 %v2516_v13, %s2351_s29  ;;  %1371 = vrot.lane.b32.xlu0 %v2516_v13, %s2349_s28 }
 0x133   :  { %442 = vrot.lane.b32.xlu1 %v2508_v12, %s2352_s15  ;;  %277 = vrot.lane.b32.xlu0 %v2508_v12, %s2353_s17 }
 0x137   :  { %772 = vrot.lane.b32.xlu1 %v2508_v12, %s2354_s18 }
 0x189   :  { %v356_v14 = vpop.permute.xlu1 %355  ;;  %v192_v15 = vpop.permute.xlu0 %191 }
 0x18a   :  { %2048 = vmatpush3.xpose.msk.msra.mxu1 %vm193_vm2, %v192_v15 }
 0x18b   :  { %2052 = vmatprep.subr.mxu1 %v2343_v8 }
 0x18d   :  { %v523_v16 = vpop.permute.xlu1 %522  ;;  %2050 = vmatmul.mubr.msk.f32.vlgmr.msra.gmra.mrb[2].mxu1 %vm193_vm2, %v2508_v12  ;;  %v358_v17 = vpop.permute.xlu0 %357 }
 0x18e   :  { %2058 = vmatpush3.xpose.msk.msra.mxu0 %vm193_vm2, %v358_v17  ;;  %2054 = vmatprep.mubr.msk.f32.mxu1 %vm2344_vm1, %v2343_v8 }
 0x18f   :  { %2067 = vmatprep.subr.mxu0 %v2343_v8 }
 0x191   :  { %v688_v18 = vpop.permute.xlu1 %687  ;;  %2060 = vmatmul.mubr.msk.f32.vlgmr.msra.gmra.mrb[0].mxu0 %vm193_vm2, %v356_v14  ;;  %v521_v19 = vpop.permute.xlu0 %520 }
 0x192   :  { %2068 = vmatpush3.xpose.msk.msra.mxu0 %vm193_vm2, %v523_v16  ;;  %2069 = vmatprep.mubr.msk.f32.mxu0 %vm2344_vm1, %v2343_v8 }
 0x193   :  { %2077 = vmatprep.subr.mxu0 %v2343_v8 }
 0x195   :  { %2070 = vmatmul.mubr.msk.f32.vlgmr.msra.gmra.mrb[2].mxu0 %vm193_vm2, %v521_v19  ;;  %v686_v20 = vpop.permute.xlu0 %685  ;;  %v877_v21 = vpop.permute.xlu1 %876 }
 0x196   :  { %2078 = vmatpush3.xpose.msk.msra.mxu0 %vm193_vm2, %v688_v18  ;;  %2079 = vmatprep.mubr.msk.f32.mxu0 %vm2344_vm1, %v2343_v8 }
 0x197   :  { %2087 = vmatprep.subr.mxu0 %v2343_v8 }
 0x199   :  { %2080 = vmatmul.mubr.msk.f32.vlgmr.msra.gmra.mrb[4].mxu0 %vm193_vm2, %v686_v20  ;;  %v1042_v22 = vpop.permute.xlu0 %1041  ;;  %v1040_v23 = vpop.permute.xlu1 %1039 }
 0x19a   :  { %2088 = vmatpush3.xpose.msk.msra.mxu0 %vm193_vm2, %v877_v21  ;;  %2089 = vmatprep.mubr.msk.f32.mxu0 %vm2344_vm1, %v2343_v8 }
 0x19b   :  { %2097 = vmatprep.subr.mxu0 %v2343_v8 }
 0x19d   :  { %2090 = vmatmul.mubr.msk.f32.vlgmr.msra.gmra.mrb[6].mxu0 %vm193_vm2, %v2516_v13  ;;  %v1207_v24 = vpop.permute.xlu0 %1206  ;;  %v1205_v26 = vpop.permute.xlu1 %1204 }
 0x19e   :  { %2098 = vmatpush3.xpose.msk.msra.mxu0 %vm193_vm2, %v1042_v22  ;;  %2099 = vmatprep.mubr.msk.f32.mxu0 %vm2344_vm1, %v2343_v8 }
 0x19f   :  { %2107 = vmatprep.subr.mxu0 %v2343_v8 }
 0x1a1   :  { %2100 = vmatmul.mubr.msk.f32.vlgmr.msra.gmra.mrb[8].mxu0 %vm193_vm2, %v1040_v23  ;;  %v1372_v25 = vpop.permute.xlu0 %1371  ;;  %v1370_v28 = vpop.permute.xlu1 %1369 }
 0x1a2   :  { %2108 = vmatpush3.xpose.msk.msra.mxu0 %vm193_vm2, %v1207_v24  ;;  %2109 = vmatprep.mubr.msk.f32.mxu0 %vm2344_vm1, %v2343_v8 }
 0x1a3   :  { %2117 = vmatprep.subr.mxu0 %v2343_v8 }
 0x1a5   :  { %2110 = vmatmul.mubr.msk.f32.vlgmr.msra.gmra.mrb[10].mxu0 %vm193_vm2, %v1205_v26  ;;  %v278_v27 = vpop.permute.xlu0 %277  ;;  %v443_v63 = vpop.permute.xlu1 %442 }
 0x1a6   :  { %2053 = vmatpush3.msra.mxu1 %v278_v27  ;;  %2118 = vmatpush3.xpose.msk.msra.mxu0 %vm193_vm2, %v1372_v25 }
 0x1a7   :  { %2119 = vmatprep.mubr.msk.f32.mxu0 %vm2344_vm1, %v2343_v8  ;;  %2062 = vmatprep.subr.mxu1 %v2343_v8 }
 0x1a9   :  { %2120 = vmatmul.mubr.msk.f32.vlgmr.msra.gmra.mrb[12].mxu0 %vm193_vm2, %v1370_v28  ;;  %v773_v0 = vpop.permute.xlu1 %772 }
 0x260   :  { %v264_v30 = vpop.f32.mrb[2].mxu1 }
 0x261   :  { %v265_v31 = vadd.f32 %v1936_v29, %v264_v30  ;;  %v2051_v32 = vpop.f32.mrb[3].mxu1 }
 0x263   :  { %v268_v33 = vsel %vm193_vm2, %v265_v31, -inf }
 0x264   :  { %269 = vmax.xlane.f32.xlu0 %v268_v33  ;;  %v429_v34 = vpop.f32.mrb[0].mxu0 }
 0x265   :  { %v430_v35 = vadd.f32 %v1936_v29, %v429_v34  ;;  %v2061_v36 = vpop.f32.mrb[1].mxu0 }
 0x267   :  { %v433_v37 = vsel %vm193_vm2, %v430_v35, -inf }
 0x268   :  { %434 = vmax.xlane.f32.xlu1 %v433_v37  ;;  %v594_v38 = vpop.f32.mrb[2].mxu0 }
 0x269   :  { %v2071_v39 = vpop.f32.mrb[3].mxu0  ;;  %v595_v53 = vadd.f32 %v1936_v29, %v594_v38 }
 0x26b   :  { %v598_v55 = vsel %vm193_vm2, %v595_v53, -inf }
 0x26c   :  { %v759_v40 = vpop.f32.mrb[4].mxu0 }
 0x26d   :  { %v2081_v41 = vpop.f32.mrb[5].mxu0  ;;  %v760_v54 = vadd.f32 %v1936_v29, %v759_v40 }
 0x26f   :  { %v763_v57 = vsel %vm193_vm2, %v760_v54, -inf }
 0x270   :  { %v948_v43 = vpop.f32.mrb[6].mxu0 }
 0x271   :  { %v2580_v44 = vadd.f32 %v1950_v42, %v948_v43  ;;  %v2091_v45 = vpop.f32.mrb[7].mxu0 }
 0x273   :  { %v952_v46 = vsel %vm193_vm2, %v2580_v44, -inf }
 0x274   :  { %953 = vmax.xlane.f32.xlu1 %v952_v46  ;;  %v1113_v47 = vpop.f32.mrb[8].mxu0 }
 0x275   :  { %v2101_v48 = vpop.f32.mrb[9].mxu0  ;;  %v1114_v56 = vadd.f32 %v1950_v42, %v1113_v47 }
 0x277   :  { %v1117_v58 = vsel %vm193_vm2, %v1114_v56, -inf }
 0x278   :  { %v1278_v49 = vpop.f32.mrb[10].mxu0 }
 0x279   :  { %v2111_v50 = vpop.f32.mrb[11].mxu0  ;;  %v1279_v59 = vadd.f32 %v1950_v42, %v1278_v49 }
 0x27a   :  { %607 = vrot.lane.b32.xlu0 %v2508_v12, %s2355_s21 }
 0x27b   :  { %v1282_v61 = vsel %vm193_vm2, %v1279_v59, -inf }
 0x27c   :  { %v1443_v51 = vpop.f32.mrb[12].mxu0 }
 0x27d   :  { %v2121_v52 = vpop.f32.mrb[13].mxu0  ;;  %v2590_v60 = vadd.f32 %v1950_v42, %v1443_v51 }
 0x27f   :  { %v1447_v62 = vsel %vm193_vm2, %v2590_v60, -inf }
 0x285   :  { %1126 = vrot.lane.b32.xlu1 %v2516_v13, %s2352_s15 }
 0x299   :  { %599 = vmax.xlane.f32.xlu0 %v598_v55 }
 0x29d   :  { %764 = vmax.xlane.f32.xlu0 %v763_v57 }
 0x2a1   :  { %1118 = vmax.xlane.f32.xlu0 %v1117_v58 }
 0x2a9   :  { %1283 = vmax.xlane.f32.xlu1 %v1282_v61 }
 0x2ad   :  { %1448 = vmax.xlane.f32.xlu1 %v1447_v62  ;;  %v1549_v62 = vld [vmem:[#allocation4] sm:$0xff] }
 0x2b7   :  { %961 = vrot.lane.b32.xlu0 %v2516_v13, %s2353_s17 }
 0x2bb   :  { %1291 = vrot.lane.b32.xlu0 %v2516_v13, %s2355_s21 }
 0x2be   :  { %1456 = vrot.lane.b32.xlu1 %v2516_v13, %s2354_s18 }
 0x2f1   :  { %v270_v1 = vpop.xlane.xlu0 %269 }
 0x2f2   :  { %v271_v2 = vsub.f32 %v265_v31, %v270_v1 }
 0x2f4   :  { %v272_v3 = vmul.f32 1.442695, %v271_v2 }
 0x2f5   :  { %v435_v4 = vpop.xlane.xlu1 %434  ;;  %v608_v12 = vpop.permute.xlu0 %607 }
 0x2f6   :  { %2228 = vpow2.f32 %v272_v3  ;;  %v436_v6 = vsub.f32 %v430_v35, %v435_v4 }
 0x2f8   :  { %v437_v9 = vmul.f32 1.442695, %v436_v6 }
 0x2fa   :  { %2230 = vpow2.f32 %v437_v9  ;;  %v1551_v9 = vld [vmem:[#allocation4 + $0x10] sm:$0xff] }
 0x300   :  { %v2600_v10 = vpop.eup %2228 }
 0x301   :  { %2055 = vmatmul.mubr.msk.f32.vlgmr.msra.gmra.mrb[4].mxu1 %vm193_vm2, %v2600_v10  ;;  %v954_v15 = vpop.xlane.xlu1 %953  ;;  %v274_v46 = vsel %vm193_vm2, %v2600_v10, 0.0  ;;  %v1552_v10 = vld [vmem:[#allocation4 + $0x18] sm:$0xff] }
 0x302   :  { %2063 = vmatpush3.msra.mxu1 %v443_v63  ;;  %2064 = vmatprep.mubr.msk.f32.mxu1 %vm2344_vm1, %v2343_v8  ;;  %v955_v18 = vsub.f32 %v2580_v44, %v954_v15  ;;  %v1550_v63 = vld [vmem:[#allocation4 + $0x8] sm:$0xff] }
 0x303   :  { %2072 = vmatprep.subr.mxu1 %v2343_v8 }
 0x304   :  { %v2231_v11 = vpop.eup %2230  ;;  %v956_v22 = vmul.f32 1.442695, %v955_v18 }
 0x305   :  { %2065 = vmatmul.mubr.msk.f32.vlgmr.msra.gmra.mrb[6].mxu1 %vm193_vm2, %v2231_v11  ;;  %v439_v13 = vsel %vm193_vm2, %v2231_v11, 0.0  ;;  %v1127_v26 = vpop.permute.xlu1 %1126  ;;  %v2180_v11 = vpack.c.bf16 %v1552_v10, %v1551_v9  ;;  %v1785_v10 = vld [vmem:[%s2723_s10 + $0x18] sm:$0xff] }
 0x306   :  { %2073 = vmatpush3.msra.mxu1 %v608_v12  ;;  %440 = vadd.xlane.f32.xlu0 %v439_v13 }
 0x307   :  { %2074 = vmatprep.mubr.msk.f32.mxu1 %vm2344_vm1, %v2343_v8  ;;  %2082 = vmatprep.subr.mxu1 %v2343_v8 }
 0x326   :  { %v600_v14 = vpop.xlane.xlu0 %599 }
 0x327   :  { %v601_v16 = vsub.f32 %v595_v53, %v600_v14 }
 0x329   :  { %v602_v17 = vmul.f32 1.442695, %v601_v16 }
 0x32a   :  { %v765_v19 = vpop.xlane.xlu0 %764 }
 0x32b   :  { %2232 = vpow2.f32 %v602_v17  ;;  %v766_v20 = vsub.f32 %v760_v54, %v765_v19 }
 0x32d   :  { %v767_v21 = vmul.f32 1.442695, %v766_v20 }
 0x32e   :  { %v1119_v23 = vpop.xlane.xlu0 %1118 }
 0x32f   :  { %2234 = vpow2.f32 %v767_v21  ;;  %v1120_v24 = vsub.f32 %v1114_v56, %v1119_v23 }
 0x330   :  { %2236 = vpow2.f32 %v956_v22 }
 0x331   :  { %v1121_v25 = vmul.f32 1.442695, %v1120_v24 }
 0x332   :  { %v962_v33 = vpop.permute.xlu0 %961 }
 0x333   :  { %2238 = vpow2.f32 %v1121_v25 }
 0x335   :  { %v2233_v27 = vpop.eup %2232 }
 0x336   :  { %v1284_v28 = vpop.xlane.xlu1 %1283  ;;  %2075 = vmatmul.mubr.msk.f32.vlgmr.msra.gmra.mrb[8].mxu1 %vm193_vm2, %v2233_v27  ;;  %v604_v29 = vsel %vm193_vm2, %v2233_v27, 0.0  ;;  %v1292_v41 = vpop.permute.xlu0 %1291 }
 0x337   :  { %v1285_v30 = vsub.f32 %v1279_v59, %v1284_v28  ;;  %2083 = vmatpush3.msra.mxu1 %v773_v0  ;;  %605 = vadd.xlane.f32.xlu1 %v604_v29  ;;  %v2176_v0 = vpack.c.bf16 %v1550_v63, %v1549_v62  ;;  %v1689_v62 = vld [vmem:[#allocation6 + $0x8] sm:$0xff] }
 0x338   :  { %2084 = vmatprep.mubr.msk.f32.mxu1 %vm2344_vm1, %v2343_v8  ;;  %2092 = vmatprep.subr.mxu1 %v2343_v8 }
 0x339   :  { %v2235_v31 = vpop.eup %2234  ;;  %v1286_v32 = vmul.f32 1.442695, %v1285_v30  ;;  %2177 = vmatprep.subr.bf16.mxu0 %v2176_v0 }
 0x33a   :  { %v1449_v34 = vpop.xlane.xlu1 %1448  ;;  %2085 = vmatmul.mubr.msk.f32.vlgmr.msra.gmra.mrb[10].mxu1 %vm193_vm2, %v2235_v31  ;;  %v769_v35 = vsel %vm193_vm2, %v2235_v31, 0.0  ;;  %v2237_v37 = vpop.eup %2236  ;;  %2179 = vmatpush3.bf16.msra.mxu0 %v2176_v0  ;;  %v1690_v0 = vld [vmem:[#allocation6 + $0x10] sm:$0xff] }
 0x33b   :  { %2240 = vpow2.f32 %v1286_v32  ;;  %v1450_v36 = vsub.f32 %v2590_v60, %v1449_v34  ;;  %2093 = vmatpush3.msra.mxu1 %v962_v33  ;;  %770 = vadd.xlane.f32.xlu0 %v769_v35  ;;  %v958_v48 = vsel %vm193_vm2, %v2237_v37, 0.0 }
 0x33c   :  { %2094 = vmatprep.mubr.msk.f32.mxu1 %vm2344_vm1, %v2343_v8  ;;  %2102 = vmatprep.subr.mxu1 %v2343_v8 }
 0x33d   :  { %v2239_v38 = vpop.eup %2238  ;;  %v1451_v39 = vmul.f32 1.442695, %v1450_v36  ;;  %2181 = vmatprep.subr.bf16.mxu0 %v2180_v11 }
 0x33e   :  { %2095 = vmatmul.mubr.msk.f32.vlgmr.msra.gmra.mrb[12].mxu1 %vm193_vm2, %v2237_v37  ;;  %v1123_v40 = vsel %vm193_vm2, %v2239_v38, 0.0  ;;  %v1457_v43 = vpop.permute.xlu1 %1456  ;;  %2183 = vmatpush3.bf16.msra.mxu0 %v2180_v11 }
 0x33f   :  { %2242 = vpow2.f32 %v1451_v39  ;;  %2103 = vmatpush3.msra.mxu1 %v1127_v26  ;;  %1124 = vadd.xlane.f32.xlu0 %v1123_v40 }
 0x340   :  { %2104 = vmatprep.mubr.msk.f32.mxu1 %vm2344_vm1, %v2343_v8  ;;  %2112 = vmatprep.subr.mxu1 %v2343_v8 }
 0x342   :  { %2105 = vmatmul.mubr.msk.f32.vlgmr.msra.gmra.mrb[14].mxu1 %vm193_vm2, %v2239_v38 }
 0x343   :  { %2113 = vmatpush3.msra.mxu1 %v1292_v41  ;;  %2114 = vmatprep.mubr.msk.f32.mxu1 %vm2344_vm1, %v2343_v8 }
 0x344   :  { %2122 = vmatprep.subr.mxu1 %v2343_v8 }
 0x345   :  { %v2241_v42 = vpop.eup %2240 }
 0x346   :  { %2115 = vmatmul.mubr.msk.f32.vlgmr.msra.gmra.mrb[16].mxu1 %vm193_vm2, %v2241_v42  ;;  %v1288_v44 = vsel %vm193_vm2, %v2241_v42, 0.0 }
 0x347   :  { %2123 = vmatpush3.msra.mxu1 %v1457_v43  ;;  %1289 = vadd.xlane.f32.xlu1 %v1288_v44 }
 0x348   :  { %2124 = vmatprep.mubr.msk.f32.mxu1 %vm2344_vm1, %v2343_v8 }
 0x349   :  { %v2243_v45 = vpop.eup %2242 }
 0x34a   :  { %2125 = vmatmul.mubr.msk.f32.vlgmr.msra.gmra.mrb[18].mxu1 %vm193_vm2, %v2243_v45  ;;  %v1453_v47 = vsel %vm193_vm2, %v2243_v45, 0.0  ;;  %v1963_v45 = vld [vmem:[%s2718_s5] ss:$0 sm:$0xff] }
 0x34b   :  { %275 = vadd.xlane.f32.xlu1 %v274_v46  ;;  %1454 = vadd.xlane.f32.xlu0 %v1453_v47 }
 0x34f   :  { %959 = vadd.xlane.f32.xlu0 %v958_v48 }
 0x393   :  { %v441_v49 = vpop.xlane.xlu0 %440 }
 0x394   :  { %2244 = vrcp.f32 %v441_v49 }
 0x39e   :  { %v2245_v52 = vpop.eup %2244 }
 0x3c4   :  { %v606_v55 = vpop.xlane.xlu1 %605 }
 0x3c5   :  { %2246 = vrcp.f32 %v606_v55 }
 0x3c8   :  { %v771_v56 = vpop.xlane.xlu0 %770 }
 0x3c9   :  { %2248 = vrcp.f32 %v771_v56 }
 0x3cc   :  { %v1125_v57 = vpop.xlane.xlu0 %1124 }
 0x3cd   :  { %2250 = vrcp.f32 %v1125_v57 }
 0x3cf   :  { %v2247_v58 = vpop.eup %2246 }
 0x3d3   :  { %v2249_v2 = vpop.eup %2248 }
 0x3d4   :  { %v349_v50 = vpop.f32.mrb[4].mxu1  ;;  %v1290_v1 = vpop.xlane.xlu1 %1289 }
 0x3d5   :  { %v2056_v51 = vpop.f32.mrb[5].mxu1  ;;  %2252 = vrcp.f32 %v1290_v1  ;;  %v1691_v1 = vld [vmem:[#allocation6 + $0x18] sm:$0xff] }
 0x3d7   :  { %v2251_v15 = vpop.eup %2250 }
 0x3d8   :  { %v514_v53 = vpop.f32.mrb[6].mxu1  ;;  %v1455_v12 = vpop.xlane.xlu0 %1454 }
 0x3d9   :  { %v519_v8 = vmul.f32 %v2245_v52, %v514_v53  ;;  %v2066_v54 = vpop.f32.mrb[7].mxu1  ;;  %2254 = vrcp.f32 %v1455_v12  ;;  %v276_v27 = vpop.xlane.xlu1 %275  ;;  %v1786_v12 = vld [vmem:[%s2723_s10 + $0x20] sm:$0xff] }
 0x3da   :  { %2256 = vrcp.f32 %v276_v27 }
 0x3db   :  { %851 = vrot.lane.b32.xlu1 %v519_v8, %s2341_s26 }
 0x3dc   :  { %v960_v28 = vpop.xlane.xlu0 %959 }
 0x3dd   :  { %2258 = vrcp.f32 %v960_v28 }
 0x3df   :  { %v2253_v19 = vpop.eup %2252 }
 0x3e3   :  { %v2255_v23 = vpop.eup %2254 }
 0x3e4   :  { %v2257_v29 = vpop.eup %2256 }
 0x3e5   :  { %v354_v31 = vmul.f32 %v2257_v29, %v349_v50 }
 0x3e7   :  { %v2259_v37 = vpop.eup %2258 }
 0x409   :  { %v679_v59 = vpop.f32.mrb[8].mxu1 }
 0x40a   :  { %v684_v60 = vmul.f32 %v2247_v58, %v679_v59  ;;  %v2076_v61 = vpop.f32.mrb[9].mxu1 }
 0x40c   :  { %855 = vrot.lane.b32.xlu0 %v684_v60, %s2356_s1 }
 0x40d   :  { %v844_v3 = vpop.f32.mrb[10].mxu1 }
 0x40e   :  { %v849_v4 = vmul.f32 %v2249_v2, %v844_v3  ;;  %v2086_v6 = vpop.f32.mrb[11].mxu1  ;;  %v2188_v2 = vpack.c.bf16 %v1691_v1, %v1690_v0  ;;  %v1782_v3 = vld [vmem:[%s2723_s10] sm:$0xff] }
 0x40f   :  { %v1784_v6 = vld [vmem:[%s2723_s10 + $0x10] sm:$0xff]  ;;  %v1974_v0 = vld [vmem:[%s2725_s12] ss:$0 sm:$0xff] }
 0x410   :  { %859 = vrot.lane.b32.xlu1 %v849_v4, %s2357_s22  ;;  %v1783_v4 = vld [vmem:[%s2723_s10 + $0x8] sm:$0xff]  ;;  %v2196_v11 = vpack.c.bf16 %v1785_v10, %v1784_v6 }
 0x411   :  { %v1033_v13 = vpop.f32.mrb[12].mxu1  ;;  %v2192_v9 = vpack.c.bf16 %v1783_v4, %v1782_v3  ;;  %v1975_v3 = vld [vmem:[%s2726_s13] ss:$0 sm:$0xff] }
 0x412   :  { %v2096_v14 = vpop.f32.mrb[13].mxu1  ;;  %v1038_v39 = vmul.f32 %v2259_v37, %v1033_v13  ;;  %v1787_v13 = vld [vmem:[%s2723_s10 + $0x28] sm:$0xff] }
 0x413   :  { %2193 = vmatprep.subr.bf16.mxu0 %v2192_v9  ;;  %v2200_v14 = vpack.c.bf16 %v1787_v13, %v1786_v12 }
 0x415   :  { %v1198_v16 = vpop.f32.mrb[14].mxu1 }
 0x416   :  { %v1203_v17 = vmul.f32 %v2251_v15, %v1198_v16  ;;  %v2106_v18 = vpop.f32.mrb[15].mxu1 }
 0x418   :  { %1535 = vrot.lane.b32.xlu1 %v1203_v17, %s2341_s26 }
 0x419   :  { %v1363_v20 = vpop.f32.mrb[16].mxu1 }
 0x41a   :  { %v1368_v21 = vmul.f32 %v2253_v19, %v1363_v20  ;;  %v2116_v22 = vpop.f32.mrb[17].mxu1 }
 0x41b   :  { %v1966_v22 = vld [vmem:[%s2719_s6] ss:$0 sm:$0xff] }
 0x41c   :  { %1539 = vrot.lane.b32.xlu0 %v1368_v21, %s2356_s1 }
 0x41d   :  { %v1528_v24 = vpop.f32.mrb[18].mxu1 }
 0x41e   :  { %v1533_v25 = vmul.f32 %v2255_v23, %v1528_v24  ;;  %v2126_v26 = vpop.f32.mrb[19].mxu1  ;;  %v1967_v24 = vld [vmem:[%s2720_s7] ss:$0 sm:$0xff] }
 0x420   :  { %1543 = vrot.lane.b32.xlu1 %v1533_v25, %s2357_s22 }
 0x44d   :  { %v852_v30 = vpop.permute.xlu1 %851 }
 0x44e   :  { %v862_v33 = vsel %vm193_vm2, %v354_v31, %v852_v30  ;;  %v1788_v31 = vld [vmem:[%s2723_s10 + $0x30] sm:$0xff] }
 0x47e   :  { %v856_v32 = vpop.permute.xlu0 %855 }
 0x47f   :  { %v864_v34 = vsel %vm863_vm3, %v862_v33, %v856_v32  ;;  %v1789_v32 = vld [vmem:[%s2723_s10 + $0x38] sm:$0xff] }
 0x480   :  { %v2204_v33 = vpack.c.bf16 %v1789_v32, %v1788_v31 }
 0x482   :  { %v860_v35 = vpop.permute.xlu1 %859 }
 0x483   :  { %v866_v36 = vsel %vm865_vm4, %v864_v34, %v860_v35  ;;  %v1968_v34 = vld [vmem:[%s2722_s9] ss:$0 sm:$0xff] }
 0x484   :  { %2135 = vmatprep.mubr.msk.f32.mxu0 %vm101_vm0, %v866_v36 }
 0x48a   :  { %v1536_v38 = vpop.permute.xlu1 %1535 }
 0x48b   :  { %v1546_v41 = vsel %vm193_vm2, %v1038_v39, %v1536_v38 }
 0x48e   :  { %v1540_v40 = vpop.permute.xlu0 %1539 }
 0x48f   :  { %v1547_v42 = vsel %vm863_vm3, %v1546_v41, %v1540_v40  ;;  %v1971_v41 = vld [vmem:[%s2724_s11] ss:$0 sm:$0xff] }
 0x492   :  { %v1544_v43 = vpop.permute.xlu1 %1543 }
 0x493   :  { %v1548_v44 = vsel %vm865_vm4, %v1547_v42, %v1544_v43 }
 0x494   :  { %2136 = vmatmul.mubr.msk.f32.vlgmr.msra.gmra.mrb[14].mxu0 %vm101_vm0, %v1548_v44 }
 0x495   :  { %2195 = vmatpush3.bf16.msra.mxu0 %v2192_v9 }
 0x496   :  { %2197 = vmatprep.subr.bf16.mxu0 %v2196_v11 }
 0x499   :  { %2199 = vmatpush3.bf16.msra.mxu0 %v2196_v11 }
 0x49a   :  { %2201 = vmatprep.subr.bf16.mxu0 %v2200_v14 }
 0x49d   :  { %2203 = vmatpush3.bf16.msra.mxu0 %v2200_v14 }
 0x49e   :  { %2205 = vmatprep.subr.bf16.mxu0 %v2204_v33 }
 0x4a1   :  { %2207 = vmatpush3.bf16.msra.mxu0 %v2204_v33 }
 0x567   :  { %v2137_v46 = vpop.f32.mrb[14].mxu0 }
 0x568   :  { %v1638_v47 = vadd.f32 %v2137_v46, %v1963_v45  ;;  %v1632_v48 = vpop.f32.mrb[15].mxu0 }
 0x569   :  { %v1633_v49 = vadd.f32 %v1963_v45, %v1632_v48 }
 0x56a   :  { %v1642_v50 = vadd.f32 %v1638_v47, %v2495_v7 }
 0x56b   :  { %v1641_v51 = vadd.f32 %v1633_v49, %v2488_v5  ;;  %v1688_v5 = vld [vmem:[#allocation6] sm:$0xff] }
 0x56c   :  { %v1646_v52 = vsel %vm101_vm0, %v1642_v50, 0.0  ;;  %v2184_v63 = vpack.c.bf16 %v1689_v62, %v1688_v5 }
 0x56d   :  { %1647 = vadd.xlane.f32.xlu1 %v1646_v52  ;;  %v1643_v53 = vsel %vm101_vm0, %v1641_v51, 0.0 }
 0x56e   :  { %1644 = vadd.xlane.f32.xlu0 %v1643_v53  ;;  %2185 = vmatprep.subr.bf16.mxu1 %v2184_v63 }
 0x56f   :  { %2187 = vmatpush3.bf16.msra.mxu1 %v2184_v63 }
 0x570   :  { %2189 = vmatprep.subr.bf16.mxu1 %v2188_v2 }
 0x573   :  { %2191 = vmatpush3.bf16.msra.mxu1 %v2188_v2 }
 0x5fa   :  { %v1648_v8 = vpop.xlane.xlu1 %1647 }
 0x5fb   :  { %v1651_v54 = vmul.f32 0.03125, %v1648_v8  ;;  %v1645_v55 = vpop.xlane.xlu0 %1644 }
 0x5fc   :  { %v1650_v56 = vmul.f32 0.03125, %v1645_v55 }
 0x5fd   :  { %v1653_v57 = vsub.f32 %v1642_v50, %v1651_v54 }
 0x5fe   :  { %v1652_v58 = vsub.f32 %v1641_v51, %v1650_v56 }
 0x5ff   :  { %v1655_v61 = vmul.f32 %v1653_v57, %v1653_v57 }
 0x600   :  { %v1654_v59 = vmul.f32 %v1652_v58, %v1652_v58 }
 0x601   :  { %v1659_v7 = vsel %vm101_vm0, %v1655_v61, 0.0 }
 0x602   :  { %v1656_v60 = vsel %vm101_vm0, %v1654_v59, 0.0 }
 0x603   :  { %1657 = vadd.xlane.f32.xlu0 %v1656_v60 }
 0x607   :  { %1660 = vadd.xlane.f32.xlu0 %v1659_v7 }
 0x690   :  { %v1658_v15 = vpop.xlane.xlu0 %1657 }
 0x691   :  { %v1662_v16 = vmul.f32 0.03125, %v1658_v15 }
 0x693   :  { %v1664_v17 = vadd.f32 1e-05, %v1662_v16 }
 0x694   :  { %v1661_v18 = vpop.xlane.xlu0 %1660 }
 0x695   :  { %2260 = vrsqrt.f32 %v1664_v17  ;;  %v1663_v19 = vmul.f32 0.03125, %v1661_v18 }
 0x697   :  { %v1665_v20 = vadd.f32 1e-05, %v1663_v19 }
 0x699   :  { %2262 = vrsqrt.f32 %v1665_v20 }
 0x69f   :  { %v2261_v21 = vpop.eup %2260 }
 0x6a0   :  { %v1668_v23 = vmul.f32 %v2261_v21, %v1652_v58 }
 0x6a2   :  { %v1677_v25 = vmul.f32 %v1966_v22, %v1668_v23 }
 0x6a3   :  { %v2263_v26 = vpop.eup %2262 }
 0x6a4   :  { %v1669_v27 = vmul.f32 %v2263_v26, %v1653_v57  ;;  %v1686_v28 = vadd.f32 %v1967_v24, %v1677_v25 }
 0x6a6   :  { %v1678_v29 = vmul.f32 %v1966_v22, %v1669_v27  ;;  %2146 = vmatprep.mubr.msk.f32.mxu1 %vm101_vm0, %v1686_v28 }
 0x6a8   :  { %v1687_v30 = vadd.f32 %v1967_v24, %v1678_v29 }
 0x6aa   :  { %2147 = vmatmul.mubr.msk.f32.vlgmr.msra.gmra.mrb[20].mxu1 %vm101_vm0, %v1687_v30 }
 0x77d   :  { %v2148_v35 = vpop.f32.mrb[20].mxu1 }
 0x77e   :  { %v1777_v36 = vadd.f32 %v2148_v35, %v1968_v34  ;;  %v1771_v37 = vpop.f32.mrb[21].mxu1 }
 0x77f   :  { %v1772_v38 = vadd.f32 %v1968_v34, %v1771_v37 }
 0x780   :  { %v1781_v40 = vmax.f32 %v1777_v36, 0.0 }
 0x781   :  { %v1780_v39 = vmax.f32 %v1772_v38, 0.0 }
 0x783   :  { %2165 = vmatprep.mubr.msk.f32.mxu0 %vm1797_vm5, %v1780_v39 }
 0x784   :  { %2166 = vmatmul.mubr.msk.f32.vlgmr.msra.gmra.mrb[16].mxu0 %vm1797_vm5, %v1781_v40 }
 0x857   :  { %v2167_v42 = vpop.f32.mrb[16].mxu0 }
 0x858   :  { %v1876_v43 = vadd.f32 %v2167_v42, %v1971_v41  ;;  %v1870_v44 = vpop.f32.mrb[17].mxu0 }
 0x859   :  { %v1871_v45 = vadd.f32 %v1971_v41, %v1870_v44 }
 0x85a   :  { %v1880_v46 = vadd.f32 %v1876_v43, %v1687_v30 }
 0x85b   :  { %v1879_v47 = vadd.f32 %v1871_v45, %v1686_v28 }
 0x85c   :  { %v1884_v48 = vsel %vm101_vm0, %v1880_v46, 0.0 }
 0x85d   :  { %1885 = vadd.xlane.f32.xlu0 %v1884_v48  ;;  %v1881_v49 = vsel %vm101_vm0, %v1879_v47, 0.0 }
 0x85e   :  { %1882 = vadd.xlane.f32.xlu1 %v1881_v49 }
 0x8ea   :  { %v1886_v50 = vpop.xlane.xlu0 %1885 }
 0x8eb   :  { %v1888_v51 = vmul.f32 0.03125, %v1886_v50  ;;  %v1883_v52 = vpop.xlane.xlu1 %1882 }
 0x8ec   :  { %v1887_v53 = vmul.f32 0.03125, %v1883_v52 }
 0x8ed   :  { %v1890_v8 = vsub.f32 %v1880_v46, %v1888_v51 }
 0x8ee   :  { %v1889_v54 = vsub.f32 %v1879_v47, %v1887_v53 }
 0x8ef   :  { %v1892_v55 = vmul.f32 %v1890_v8, %v1890_v8 }
 0x8f0   :  { %v1891_v56 = vmul.f32 %v1889_v54, %v1889_v54 }
 0x8f1   :  { %v1896_v57 = vsel %vm101_vm0, %v1892_v55, 0.0 }
 0x8f2   :  { %1897 = vadd.xlane.f32.xlu0 %v1896_v57  ;;  %v1893_v58 = vsel %vm101_vm0, %v1891_v56, 0.0 }
 0x8f3   :  { %1894 = vadd.xlane.f32.xlu1 %v1893_v58 }
 0x97f   :  { %v1898_v59 = vpop.xlane.xlu0 %1897 }
 0x980   :  { %v1900_v60 = vmul.f32 0.03125, %v1898_v59  ;;  %v1895_v61 = vpop.xlane.xlu1 %1894 }
 0x981   :  { %v1899_v7 = vmul.f32 0.03125, %v1895_v61 }
 0x982   :  { %v1902_v5 = vadd.f32 1e-05, %v1900_v60 }
 0x983   :  { %v1901_v62 = vadd.f32 1e-05, %v1899_v7 }
 0x984   :  { %2264 = vrsqrt.f32 %v1902_v5 }
 0x985   :  { %2266 = vrsqrt.f32 %v1901_v62 }
 0x98e   :  { %v2265_v63 = vpop.eup %2264 }
 0x98f   :  { %v2267_v1 = vpop.eup %2266  ;;  %v1906_v2 = vmul.f32 %v2265_v63, %v1890_v8 }
 0x990   :  { %v1905_v4 = vmul.f32 %v2267_v1, %v1889_v54 }
 0x991   :  { %v1915_v6 = vmul.f32 %v1974_v0, %v1906_v2 }
 0x992   :  { %v1914_v9 = vmul.f32 %v1974_v0, %v1905_v4 }
 0x993   :  { %v1924_v10 = vadd.f32 %v1975_v3, %v1915_v6 }
 0x994   :  { %v1923_v11 = vadd.f32 %v1975_v3, %v1914_v9 }
 0x995   :  { %1926 = vst.msk [vmem:[%s2727_s14 + $0x8] sm:$0xff] %vm101_vm0, %v1924_v10 }
 0x996   :  { %1925 = vst.msk [vmem:[%s2727_s14] sm:$0xff] %vm101_vm0, %v1923_v11 }
 0x997   :  { %1931 = vsyncpa [#allocation3], 1 }
 0x998   :  { %1932 = vsyncpa [#allocation5], 1 }

</bundles_post_ra>
